<compile_context>
chip_gen: v6e
topology: v6e:2x2x1
jax: 0.10.0
libtpu: 0.0.40
codegen_flags: <defaults>
</compile_context>

<pallas_src>
import functools
import math

import jax
import jax.numpy as jnp
from jax.experimental import pallas as pl
from jax.experimental.pallas import tpu as pltpu


def _layer_norm(x, gamma, beta, eps=1e-5):
    mean = jnp.mean(x, axis=-1, keepdims=True)
    var = jnp.mean((x - mean) ** 2, axis=-1, keepdims=True)
    return (x - mean) * jax.lax.rsqrt(var + eps) * gamma + beta


# ----------------------------------------------------------------------------
# Fused kernel: nlayers x (MHA + FFN + 2 LayerNorms) -> final LayerNorm -> proj.
# Weights for all layers are stacked along a leading layer axis and indexed with
# a static Python loop (fully unrolled).
# ----------------------------------------------------------------------------
def _style_encoder_kernel(z_ref,
                          wqkv_ref, bqkv_ref, wo_ref, bo_ref,
                          g1_ref, bt1_ref, w1_ref, b1_ref,
                          w2_ref, b2_ref, g2_ref, bt2_ref,
                          gf_ref, bf_ref, wout_ref, bout_ref,
                          o_ref, *, nlayers, nhead, head_dim, batch, seq):
    E = nhead * head_dim
    x = z_ref[...].reshape(batch * seq, E)            # flatten batch into matmul M dim

    for l in range(nlayers):                          # static unroll over encoder layers
        # --- fused QKV projection on the (B*L, E) slab (softmax scale pre-folded into Q) ---
        qkv = (jnp.dot(x, wqkv_ref[l], preferred_element_type=jnp.float32)
               + bqkv_ref[l])                         # (B*L, 3E)
        q = qkv[:, 0 * E:1 * E].reshape(batch, seq, E)
        k = qkv[:, 1 * E:2 * E].reshape(batch, seq, E)
        v = qkv[:, 2 * E:3 * E].reshape(batch, seq, E)

        # --- multi-head self-attention; concat folded into rows of W_o ---
        wo_l = wo_ref[l]                              # (E, E)
        attn = jnp.zeros((batch * seq, E), jnp.float32)
        for h in range(nhead):                        # static unroll over heads
            sl = slice(h * head_dim, (h + 1) * head_dim)
            qh, kh, vh = q[:, :, sl], k[:, :, sl], v[:, :, sl]
            s = jnp.einsum('bqd,bkd->bqk', qh, kh,
                           preferred_element_type=jnp.float32)       # (B, L, L)
            s = s - jnp.max(s, axis=-1, keepdims=True)
            p = jnp.exp(s)
            p = p * pl.reciprocal(jnp.sum(p, axis=-1, keepdims=True), approx=True)
            oh = jnp.einsum('bqk,bkd->bqd', p, vh,
                            preferred_element_type=jnp.float32)      # (B, L, d_h)
            attn = attn + jnp.dot(oh.reshape(batch * seq, head_dim), wo_l[sl, :],
                                  preferred_element_type=jnp.float32)
        attn = attn + bo_ref[l]

        # residual + LayerNorm1 (PyTorch post-norm default)
        x = _layer_norm(x + attn, g1_ref[l], bt1_ref[l])

        # feed-forward (relu) + residual + LayerNorm2
        hmid = jnp.maximum(
            jnp.dot(x, w1_ref[l], preferred_element_type=jnp.float32) + b1_ref[l], 0.0)
        ff = jnp.dot(hmid, w2_ref[l], preferred_element_type=jnp.float32) + b2_ref[l]
        x = _layer_norm(x + ff, g2_ref[l], bt2_ref[l])

    # --- final TransformerEncoder norm (per-token) on root token + output projection ---
    root = x.reshape(batch, seq, E)[:, 0, :]          # (B, E)
    root = _layer_norm(root, gf_ref[...], bf_ref[...])
    # TODO(synk): latent_size=16 output is lane-sparse (masked store); negligible here.
    o_ref[...] = (jnp.dot(root, wout_ref[...], preferred_element_type=jnp.float32)
                  + bout_ref[...])


def style_encoder_pallas(z, params):
    B, L, E = z.shape
    nhead = params["nhead"]
    nlayers = params["wqkv_t"].shape[0]
    latent_size = params["wout_t"].shape[1]

    kernel = functools.partial(
        _style_encoder_kernel, nlayers=nlayers, nhead=nhead,
        head_dim=E // nhead, batch=B, seq=L)

    args = (z,
            params["wqkv_t"], params["bqkv"], params["wo_t"], params["bo"],
            params["g1"], params["bt1"], params["w1_t"], params["b1"],
            params["w2_t"], params["b2"], params["g2"], params["bt2"],
            params["gf"], params["bf"], params["wout_t"], params["bout"])

    return pl.pallas_call(
        kernel,
        out_shape=jax.ShapeDtypeStruct((B, latent_size), jnp.float32),
        in_specs=[pl.BlockSpec(memory_space=pltpu.MemorySpace.VMEM) for _ in args],
        out_specs=pl.BlockSpec(memory_space=pltpu.MemorySpace.VMEM),
    )(*args)


# ----------------------------------------------------------------------------
# Parameter construction (deterministic, synthetic) and forward glue.
# ----------------------------------------------------------------------------
def sinusoidal_pe(max_len, d_model):
    position = jnp.arange(max_len, dtype=jnp.float32)[:, None]
    div_term = jnp.exp(jnp.arange(0, d_model, 2, dtype=jnp.float32)
                       * (-math.log(10000.0) / d_model))
    pe = jnp.zeros((max_len, d_model), jnp.float32)
    pe = pe.at[:, 0::2].set(jnp.sin(position * div_term))
    pe = pe.at[:, 1::2].set(jnp.cos(position * div_term))
    return pe


def init_params(key, *, ninp, nhead, nhid, nlayers, latent_size, max_num_limbs):
    head_dim = ninp // nhead
    scale = 1.0 / math.sqrt(head_dim)

    def dense(k, shape, s=0.02):
        return (s * jax.random.normal(k, shape)).astype(jnp.float32)

    keys = list(jax.random.split(key, nlayers * 5 + 2))
    ki = 0
    stacks = {n: [] for n in ("wqkv_t", "bqkv", "wo_t", "bo", "g1", "bt1",
                              "w1_t", "b1", "w2_t", "b2", "g2", "bt2")}
    for _ in range(nlayers):
        wqkv = dense(keys[ki], (3 * ninp, ninp)); ki += 1
        bqkv = dense(keys[ki], (3 * ninp,)); ki += 1
        wo = dense(keys[ki], (ninp, ninp)); ki += 1
        w1 = dense(keys[ki], (nhid, ninp)); ki += 1
        w2 = dense(keys[ki], (ninp, nhid)); ki += 1
        # fold the attention softmax scale 1/sqrt(head_dim) into the Q projection
        wqkv = wqkv.at[:ninp, :].multiply(scale)
        bqkv = bqkv.at[:ninp].multiply(scale)

        stacks["wqkv_t"].append(wqkv.T)                         # (E, 3E)
        stacks["bqkv"].append(bqkv[None, :])                    # (1, 3E)
        stacks["wo_t"].append(wo.T)                             # (E, E)
        stacks["bo"].append(jnp.zeros((1, ninp), jnp.float32))
        stacks["g1"].append(jnp.ones((1, ninp), jnp.float32))
        stacks["bt1"].append(jnp.zeros((1, ninp), jnp.float32))
        stacks["w1_t"].append(w1.T)                             # (E, nhid)
        stacks["b1"].append(jnp.zeros((1, nhid), jnp.float32))
        stacks["w2_t"].append(w2.T)                             # (nhid, E)
        stacks["b2"].append(jnp.zeros((1, ninp), jnp.float32))
        stacks["g2"].append(jnp.ones((1, ninp), jnp.float32))
        stacks["bt2"].append(jnp.zeros((1, ninp), jnp.float32))

    struct_emb = dense(keys[ki], (max_num_limbs, ninp)); ki += 1
    wout = dense(keys[ki], (latent_size, ninp)); ki += 1

    params = {name: jnp.stack(vals) for name, vals in stacks.items()}
    params.update({
        "nhead": nhead,
        "pe_table": sinusoidal_pe(max_num_limbs, ninp),          # (L, E)
        "struct_emb": struct_emb,                                # (L, E) lookup table
        "gf": jnp.ones((1, ninp), jnp.float32),
        "bf": jnp.zeros((1, ninp), jnp.float32),
        "wout_t": wout.T,                                        # (E, latent)
        "bout": jnp.zeros((1, latent_size), jnp.float32),
    })
    return params


def style_encoder_forward(topology, params):
    """topology: int32 (B, max_num_limbs) parent indices."""
    # z = pe(topology) + structure_emb(topology)   (cheap embedding lookups, plain JAX)
    # TODO(synk): jnp.take clamps out-of-range indices (e.g. -1 sentinels) unlike nn.Embedding.
    pe = params["pe_table"][None, :, :]                          # (1, L, E)
    struct = jnp.take(params["struct_emb"], topology, axis=0)    # (B, L, E)
    z = (pe + struct).astype(jnp.float32)

    # entire transformer encoder + final LN + output projection: one fused Pallas kernel
    return style_encoder_pallas(z, params)


if __name__ == "__main__":
    feature_size = 12         # unused in forward (as in the PyTorch module)
    latent_size = 16
    ninp, nhead, nhid, nlayers = 32, 4, 64, 2
    max_num_limbs = 8
    B = 2

    key = jax.random.PRNGKey(0)
    k_top, k_params = jax.random.split(key)

    topology = jax.random.randint(k_top, (B, max_num_limbs), 0, max_num_limbs,
                                  dtype=jnp.int32)
    params = init_params(k_params, ninp=ninp, nhead=nhead, nhid=nhid,
                         nlayers=nlayers, latent_size=latent_size,
                         max_num_limbs=max_num_limbs)

    out = style_encoder_forward(topology, params)
    out = jax.block_until_ready(out)

    assert out.shape == (B, latent_size), out.shape
    assert bool(jnp.all(jnp.isfinite(out)))
    print("KERNEL_OK")
</pallas_src>

<mosaic_0001>
module attributes {stable_mosaic.version = 11 : i64} {
  func.func @_style_encoder_kernel(%arg0: memref<2x8x32xf32, #tpu.memory_space<vmem>>, %arg1: memref<2x32x96xf32, #tpu.memory_space<vmem>>, %arg2: memref<2x1x96xf32, #tpu.memory_space<vmem>>, %arg3: memref<2x32x32xf32, #tpu.memory_space<vmem>>, %arg4: memref<2x1x32xf32, #tpu.memory_space<vmem>>, %arg5: memref<2x1x32xf32, #tpu.memory_space<vmem>>, %arg6: memref<2x1x32xf32, #tpu.memory_space<vmem>>, %arg7: memref<2x32x64xf32, #tpu.memory_space<vmem>>, %arg8: memref<2x1x64xf32, #tpu.memory_space<vmem>>, %arg9: memref<2x64x32xf32, #tpu.memory_space<vmem>>, %arg10: memref<2x1x32xf32, #tpu.memory_space<vmem>>, %arg11: memref<2x1x32xf32, #tpu.memory_space<vmem>>, %arg12: memref<2x1x32xf32, #tpu.memory_space<vmem>>, %arg13: memref<1x32xf32, #tpu.memory_space<vmem>>, %arg14: memref<1x32xf32, #tpu.memory_space<vmem>>, %arg15: memref<32x16xf32, #tpu.memory_space<vmem>>, %arg16: memref<1x16xf32, #tpu.memory_space<vmem>>, %arg17: memref<2x16xf32, #tpu.memory_space<vmem>>) attributes {dimension_semantics = [], scalar_prefetch = 0 : i64, scratch_operands = 0 : i64, tpu.core_type = #tpu.core_type<tc>} {
    %c0 = arith.constant 0 : index
    %c0_0 = arith.constant 0 : index
    %c0_1 = arith.constant 0 : index
    %0 = vector.load %arg0[%c0, %c0_0, %c0_1] : memref<2x8x32xf32, #tpu.memory_space<vmem>>, vector<2x8x32xf32>
    %1 = vector.shape_cast %0 : vector<2x8x32xf32> to vector<16x32xf32>
    %c0_2 = arith.constant 0 : index
    %c0_3 = arith.constant 0 : index
    %c0_4 = arith.constant 0 : index
    %2 = vector.load %arg1[%c0_2, %c0_3, %c0_4] : memref<2x32x96xf32, #tpu.memory_space<vmem>>, vector<1x32x96xf32>
    %3 = vector.shape_cast %2 : vector<1x32x96xf32> to vector<32x96xf32>
    %cst = arith.constant dense<0.000000e+00> : vector<16x96xf32>
    %4 = tpu.matmul %1, %3, %cst {dimension_numbers = #tpu.dot_dimension_numbers<[1], [0], [0], [1], [0, 0, 1, 1], [], []>} : vector<16x32xf32>, vector<32x96xf32>, vector<16x96xf32> -> vector<16x96xf32>
    %c0_5 = arith.constant 0 : index
    %c0_6 = arith.constant 0 : index
    %c0_7 = arith.constant 0 : index
    %5 = vector.load %arg2[%c0_5, %c0_6, %c0_7] : memref<2x1x96xf32, #tpu.memory_space<vmem>>, vector<1x1x96xf32>
    %6 = vector.shape_cast %5 : vector<1x1x96xf32> to vector<1x96xf32>
    %7 = vector.broadcast %6 : vector<1x96xf32> to vector<16x96xf32>
    %8 = arith.addf %4, %7 : vector<16x96xf32>
    %9 = vector.extract_strided_slice %8 {offsets = [0, 0], sizes = [16, 32], strides = [1, 1]} : vector<16x96xf32> to vector<16x32xf32>
    %10 = vector.shape_cast %9 : vector<16x32xf32> to vector<2x8x32xf32>
    %11 = vector.extract_strided_slice %8 {offsets = [0, 32], sizes = [16, 32], strides = [1, 1]} : vector<16x96xf32> to vector<16x32xf32>
    %12 = vector.shape_cast %11 : vector<16x32xf32> to vector<2x8x32xf32>
    %13 = vector.extract_strided_slice %8 {offsets = [0, 64], sizes = [16, 32], strides = [1, 1]} : vector<16x96xf32> to vector<16x32xf32>
    %14 = vector.shape_cast %13 : vector<16x32xf32> to vector<2x8x32xf32>
    %c0_8 = arith.constant 0 : index
    %c0_9 = arith.constant 0 : index
    %c0_10 = arith.constant 0 : index
    %15 = vector.load %arg3[%c0_8, %c0_9, %c0_10] : memref<2x32x32xf32, #tpu.memory_space<vmem>>, vector<1x32x32xf32>
    %16 = vector.shape_cast %15 : vector<1x32x32xf32> to vector<32x32xf32>
    %cst_11 = arith.constant 0.000000e+00 : f32
    %17 = vector.broadcast %cst_11 : f32 to vector<16x32xf32>
    %18 = vector.extract_strided_slice %10 {offsets = [0, 0, 0], sizes = [2, 8, 8], strides = [1, 1, 1]} : vector<2x8x32xf32> to vector<2x8x8xf32>
    %19 = vector.extract_strided_slice %12 {offsets = [0, 0, 0], sizes = [2, 8, 8], strides = [1, 1, 1]} : vector<2x8x32xf32> to vector<2x8x8xf32>
    %20 = vector.extract_strided_slice %14 {offsets = [0, 0, 0], sizes = [2, 8, 8], strides = [1, 1, 1]} : vector<2x8x32xf32> to vector<2x8x8xf32>
    "tpu.trace_start"() <{level = 10 : i32, message = "bqd,bkd->bqk"}> : () -> ()
    %cst_12 = arith.constant dense<0.000000e+00> : vector<2x8x8xf32>
    %21 = tpu.matmul %18, %19, %cst_12 {dimension_numbers = #tpu.dot_dimension_numbers<[2], [2], [1], [1], [0, 0, 0, 1, 1, 1], [0], [0]>} : vector<2x8x8xf32>, vector<2x8x8xf32>, vector<2x8x8xf32> -> vector<2x8x8xf32>
    "tpu.trace_stop"() : () -> ()
    %cst_13 = arith.constant dense<0xFF800000> : vector<2x8xf32>
    %22 = vector.multi_reduction <maximumf>, %21, %cst_13 [2] : vector<2x8x8xf32> to vector<2x8xf32>
    %23 = vector.shape_cast %22 : vector<2x8xf32> to vector<2x8x1xf32>
    %24 = vector.broadcast %23 : vector<2x8x1xf32> to vector<2x8x8xf32>
    %25 = arith.subf %21, %24 : vector<2x8x8xf32>
    %26 = math.exp %25 : vector<2x8x8xf32>
    %cst_14 = arith.constant dense<0.000000e+00> : vector<2x8xf32>
    %27 = vector.multi_reduction <add>, %26, %cst_14 [2] : vector<2x8x8xf32> to vector<2x8xf32>
    %28 = vector.shape_cast %27 : vector<2x8xf32> to vector<2x8x1xf32>
    %29 = tpu.reciprocal %28 {approx = true} : vector<2x8x1xf32> -> vector<2x8x1xf32>
    %30 = vector.broadcast %29 : vector<2x8x1xf32> to vector<2x8x8xf32>
    %31 = arith.mulf %26, %30 : vector<2x8x8xf32>
    "tpu.trace_start"() <{level = 10 : i32, message = "bqk,bkd->bqd"}> : () -> ()
    %cst_15 = arith.constant dense<0.000000e+00> : vector<2x8x8xf32>
    %32 = tpu.matmul %31, %20, %cst_15 {dimension_numbers = #tpu.dot_dimension_numbers<[2], [1], [1], [2], [0, 0, 0, 1, 1, 2], [0], [0]>} : vector<2x8x8xf32>, vector<2x8x8xf32>, vector<2x8x8xf32> -> vector<2x8x8xf32>
    "tpu.trace_stop"() : () -> ()
    %33 = vector.shape_cast %32 : vector<2x8x8xf32> to vector<16x8xf32>
    %34 = vector.extract_strided_slice %16 {offsets = [0, 0], sizes = [8, 32], strides = [1, 1]} : vector<32x32xf32> to vector<8x32xf32>
    %cst_16 = arith.constant dense<0.000000e+00> : vector<16x32xf32>
    %35 = tpu.matmul %33, %34, %cst_16 {dimension_numbers = #tpu.dot_dimension_numbers<[1], [0], [0], [1], [0, 0, 1, 1], [], []>} : vector<16x8xf32>, vector<8x32xf32>, vector<16x32xf32> -> vector<16x32xf32>
    %36 = arith.addf %17, %35 : vector<16x32xf32>
    %37 = vector.extract_strided_slice %10 {offsets = [0, 0, 8], sizes = [2, 8, 8], strides = [1, 1, 1]} : vector<2x8x32xf32> to vector<2x8x8xf32>
    %38 = vector.extract_strided_slice %12 {offsets = [0, 0, 8], sizes = [2, 8, 8], strides = [1, 1, 1]} : vector<2x8x32xf32> to vector<2x8x8xf32>
    %39 = vector.extract_strided_slice %14 {offsets = [0, 0, 8], sizes = [2, 8, 8], strides = [1, 1, 1]} : vector<2x8x32xf32> to vector<2x8x8xf32>
    "tpu.trace_start"() <{level = 10 : i32, message = "bqd,bkd->bqk"}> : () -> ()
    %cst_17 = arith.constant dense<0.000000e+00> : vector<2x8x8xf32>
    %40 = tpu.matmul %37, %38, %cst_17 {dimension_numbers = #tpu.dot_dimension_numbers<[2], [2], [1], [1], [0, 0, 0, 1, 1, 1], [0], [0]>} : vector<2x8x8xf32>, vector<2x8x8xf32>, vector<2x8x8xf32> -> vector<2x8x8xf32>
    "tpu.trace_stop"() : () -> ()
    %cst_18 = arith.constant dense<0xFF800000> : vector<2x8xf32>
    %41 = vector.multi_reduction <maximumf>, %40, %cst_18 [2] : vector<2x8x8xf32> to vector<2x8xf32>
    %42 = vector.shape_cast %41 : vector<2x8xf32> to vector<2x8x1xf32>
    %43 = vector.broadcast %42 : vector<2x8x1xf32> to vector<2x8x8xf32>
    %44 = arith.subf %40, %43 : vector<2x8x8xf32>
    %45 = math.exp %44 : vector<2x8x8xf32>
    %cst_19 = arith.constant dense<0.000000e+00> : vector<2x8xf32>
    %46 = vector.multi_reduction <add>, %45, %cst_19 [2] : vector<2x8x8xf32> to vector<2x8xf32>
    %47 = vector.shape_cast %46 : vector<2x8xf32> to vector<2x8x1xf32>
    %48 = tpu.reciprocal %47 {approx = true} : vector<2x8x1xf32> -> vector<2x8x1xf32>
    %49 = vector.broadcast %48 : vector<2x8x1xf32> to vector<2x8x8xf32>
    %50 = arith.mulf %45, %49 : vector<2x8x8xf32>
    "tpu.trace_start"() <{level = 10 : i32, message = "bqk,bkd->bqd"}> : () -> ()
    %cst_20 = arith.constant dense<0.000000e+00> : vector<2x8x8xf32>
    %51 = tpu.matmul %50, %39, %cst_20 {dimension_numbers = #tpu.dot_dimension_numbers<[2], [1], [1], [2], [0, 0, 0, 1, 1, 2], [0], [0]>} : vector<2x8x8xf32>, vector<2x8x8xf32>, vector<2x8x8xf32> -> vector<2x8x8xf32>
    "tpu.trace_stop"() : () -> ()
    %52 = vector.shape_cast %51 : vector<2x8x8xf32> to vector<16x8xf32>
    %53 = vector.extract_strided_slice %16 {offsets = [8, 0], sizes = [8, 32], strides = [1, 1]} : vector<32x32xf32> to vector<8x32xf32>
    %cst_21 = arith.constant dense<0.000000e+00> : vector<16x32xf32>
    %54 = tpu.matmul %52, %53, %cst_21 {dimension_numbers = #tpu.dot_dimension_numbers<[1], [0], [0], [1], [0, 0, 1, 1], [], []>} : vector<16x8xf32>, vector<8x32xf32>, vector<16x32xf32> -> vector<16x32xf32>
    %55 = arith.addf %36, %54 : vector<16x32xf32>
    %56 = vector.extract_strided_slice %10 {offsets = [0, 0, 16], sizes = [2, 8, 8], strides = [1, 1, 1]} : vector<2x8x32xf32> to vector<2x8x8xf32>
    %57 = vector.extract_strided_slice %12 {offsets = [0, 0, 16], sizes = [2, 8, 8], strides = [1, 1, 1]} : vector<2x8x32xf32> to vector<2x8x8xf32>
    %58 = vector.extract_strided_slice %14 {offsets = [0, 0, 16], sizes = [2, 8, 8], strides = [1, 1, 1]} : vector<2x8x32xf32> to vector<2x8x8xf32>
    "tpu.trace_start"() <{level = 10 : i32, message = "bqd,bkd->bqk"}> : () -> ()
    %cst_22 = arith.constant dense<0.000000e+00> : vector<2x8x8xf32>
    %59 = tpu.matmul %56, %57, %cst_22 {dimension_numbers = #tpu.dot_dimension_numbers<[2], [2], [1], [1], [0, 0, 0, 1, 1, 1], [0], [0]>} : vector<2x8x8xf32>, vector<2x8x8xf32>, vector<2x8x8xf32> -> vector<2x8x8xf32>
    "tpu.trace_stop"() : () -> ()
    %cst_23 = arith.constant dense<0xFF800000> : vector<2x8xf32>
    %60 = vector.multi_reduction <maximumf>, %59, %cst_23 [2] : vector<2x8x8xf32> to vector<2x8xf32>
    %61 = vector.shape_cast %60 : vector<2x8xf32> to vector<2x8x1xf32>
    %62 = vector.broadcast %61 : vector<2x8x1xf32> to vector<2x8x8xf32>
    %63 = arith.subf %59, %62 : vector<2x8x8xf32>
    %64 = math.exp %63 : vector<2x8x8xf32>
    %cst_24 = arith.constant dense<0.000000e+00> : vector<2x8xf32>
    %65 = vector.multi_reduction <add>, %64, %cst_24 [2] : vector<2x8x8xf32> to vector<2x8xf32>
    %66 = vector.shape_cast %65 : vector<2x8xf32> to vector<2x8x1xf32>
    %67 = tpu.reciprocal %66 {approx = true} : vector<2x8x1xf32> -> vector<2x8x1xf32>
    %68 = vector.broadcast %67 : vector<2x8x1xf32> to vector<2x8x8xf32>
    %69 = arith.mulf %64, %68 : vector<2x8x8xf32>
    "tpu.trace_start"() <{level = 10 : i32, message = "bqk,bkd->bqd"}> : () -> ()
    %cst_25 = arith.constant dense<0.000000e+00> : vector<2x8x8xf32>
    %70 = tpu.matmul %69, %58, %cst_25 {dimension_numbers = #tpu.dot_dimension_numbers<[2], [1], [1], [2], [0, 0, 0, 1, 1, 2], [0], [0]>} : vector<2x8x8xf32>, vector<2x8x8xf32>, vector<2x8x8xf32> -> vector<2x8x8xf32>
    "tpu.trace_stop"() : () -> ()
    %71 = vector.shape_cast %70 : vector<2x8x8xf32> to vector<16x8xf32>
    %72 = vector.extract_strided_slice %16 {offsets = [16, 0], sizes = [8, 32], strides = [1, 1]} : vector<32x32xf32> to vector<8x32xf32>
    %cst_26 = arith.constant dense<0.000000e+00> : vector<16x32xf32>
    %73 = tpu.matmul %71, %72, %cst_26 {dimension_numbers = #tpu.dot_dimension_numbers<[1], [0], [0], [1], [0, 0, 1, 1], [], []>} : vector<16x8xf32>, vector<8x32xf32>, vector<16x32xf32> -> vector<16x32xf32>
    %74 = arith.addf %55, %73 : vector<16x32xf32>
    %75 = vector.extract_strided_slice %10 {offsets = [0, 0, 24], sizes = [2, 8, 8], strides = [1, 1, 1]} : vector<2x8x32xf32> to vector<2x8x8xf32>
    %76 = vector.extract_strided_slice %12 {offsets = [0, 0, 24], sizes = [2, 8, 8], strides = [1, 1, 1]} : vector<2x8x32xf32> to vector<2x8x8xf32>
    %77 = vector.extract_strided_slice %14 {offsets = [0, 0, 24], sizes = [2, 8, 8], strides = [1, 1, 1]} : vector<2x8x32xf32> to vector<2x8x8xf32>
    "tpu.trace_start"() <{level = 10 : i32, message = "bqd,bkd->bqk"}> : () -> ()
    %cst_27 = arith.constant dense<0.000000e+00> : vector<2x8x8xf32>
    %78 = tpu.matmul %75, %76, %cst_27 {dimension_numbers = #tpu.dot_dimension_numbers<[2], [2], [1], [1], [0, 0, 0, 1, 1, 1], [0], [0]>} : vector<2x8x8xf32>, vector<2x8x8xf32>, vector<2x8x8xf32> -> vector<2x8x8xf32>
    "tpu.trace_stop"() : () -> ()
    %cst_28 = arith.constant dense<0xFF800000> : vector<2x8xf32>
    %79 = vector.multi_reduction <maximumf>, %78, %cst_28 [2] : vector<2x8x8xf32> to vector<2x8xf32>
    %80 = vector.shape_cast %79 : vector<2x8xf32> to vector<2x8x1xf32>
    %81 = vector.broadcast %80 : vector<2x8x1xf32> to vector<2x8x8xf32>
    %82 = arith.subf %78, %81 : vector<2x8x8xf32>
    %83 = math.exp %82 : vector<2x8x8xf32>
    %cst_29 = arith.constant dense<0.000000e+00> : vector<2x8xf32>
    %84 = vector.multi_reduction <add>, %83, %cst_29 [2] : vector<2x8x8xf32> to vector<2x8xf32>
    %85 = vector.shape_cast %84 : vector<2x8xf32> to vector<2x8x1xf32>
    %86 = tpu.reciprocal %85 {approx = true} : vector<2x8x1xf32> -> vector<2x8x1xf32>
    %87 = vector.broadcast %86 : vector<2x8x1xf32> to vector<2x8x8xf32>
    %88 = arith.mulf %83, %87 : vector<2x8x8xf32>
    "tpu.trace_start"() <{level = 10 : i32, message = "bqk,bkd->bqd"}> : () -> ()
    %cst_30 = arith.constant dense<0.000000e+00> : vector<2x8x8xf32>
    %89 = tpu.matmul %88, %77, %cst_30 {dimension_numbers = #tpu.dot_dimension_numbers<[2], [1], [1], [2], [0, 0, 0, 1, 1, 2], [0], [0]>} : vector<2x8x8xf32>, vector<2x8x8xf32>, vector<2x8x8xf32> -> vector<2x8x8xf32>
    "tpu.trace_stop"() : () -> ()
    %90 = vector.shape_cast %89 : vector<2x8x8xf32> to vector<16x8xf32>
    %91 = vector.extract_strided_slice %16 {offsets = [24, 0], sizes = [8, 32], strides = [1, 1]} : vector<32x32xf32> to vector<8x32xf32>
    %cst_31 = arith.constant dense<0.000000e+00> : vector<16x32xf32>
    %92 = tpu.matmul %90, %91, %cst_31 {dimension_numbers = #tpu.dot_dimension_numbers<[1], [0], [0], [1], [0, 0, 1, 1], [], []>} : vector<16x8xf32>, vector<8x32xf32>, vector<16x32xf32> -> vector<16x32xf32>
    %93 = arith.addf %74, %92 : vector<16x32xf32>
    %c0_32 = arith.constant 0 : index
    %c0_33 = arith.constant 0 : index
    %c0_34 = arith.constant 0 : index
    %94 = vector.load %arg4[%c0_32, %c0_33, %c0_34] : memref<2x1x32xf32, #tpu.memory_space<vmem>>, vector<1x1x32xf32>
    %95 = vector.shape_cast %94 : vector<1x1x32xf32> to vector<1x32xf32>
    %96 = vector.broadcast %95 : vector<1x32xf32> to vector<16x32xf32>
    %97 = arith.addf %93, %96 : vector<16x32xf32>
    %98 = arith.addf %1, %97 : vector<16x32xf32>
    %c0_35 = arith.constant 0 : index
    %c0_36 = arith.constant 0 : index
    %c0_37 = arith.constant 0 : index
    %99 = vector.load %arg5[%c0_35, %c0_36, %c0_37] : memref<2x1x32xf32, #tpu.memory_space<vmem>>, vector<1x1x32xf32>
    %100 = vector.shape_cast %99 : vector<1x1x32xf32> to vector<1x32xf32>
    %c0_38 = arith.constant 0 : index
    %c0_39 = arith.constant 0 : index
    %c0_40 = arith.constant 0 : index
    %101 = vector.load %arg6[%c0_38, %c0_39, %c0_40] : memref<2x1x32xf32, #tpu.memory_space<vmem>>, vector<1x1x32xf32>
    %102 = vector.shape_cast %101 : vector<1x1x32xf32> to vector<1x32xf32>
    %cst_41 = arith.constant dense<0.000000e+00> : vector<16xf32>
    %103 = vector.multi_reduction <add>, %98, %cst_41 [1] : vector<16x32xf32> to vector<16xf32>
    %104 = vector.shape_cast %103 : vector<16xf32> to vector<16x1xf32>
    %cst_42 = arith.constant 3.200000e+01 : f32
    %105 = vector.broadcast %cst_42 : f32 to vector<16x1xf32>
    %106 = arith.divf %104, %105 : vector<16x1xf32>
    %107 = vector.broadcast %106 : vector<16x1xf32> to vector<16x32xf32>
    %108 = arith.subf %98, %107 : vector<16x32xf32>
    %109 = arith.mulf %108, %108 : vector<16x32xf32>
    %cst_43 = arith.constant dense<0.000000e+00> : vector<16xf32>
    %110 = vector.multi_reduction <add>, %109, %cst_43 [1] : vector<16x32xf32> to vector<16xf32>
    %111 = vector.shape_cast %110 : vector<16xf32> to vector<16x1xf32>
    %cst_44 = arith.constant 3.200000e+01 : f32
    %112 = vector.broadcast %cst_44 : f32 to vector<16x1xf32>
    %113 = arith.divf %111, %112 : vector<16x1xf32>
    %114 = vector.broadcast %106 : vector<16x1xf32> to vector<16x32xf32>
    %115 = arith.subf %98, %114 : vector<16x32xf32>
    %cst_45 = arith.constant 9.99999974E-6 : f32
    %116 = vector.broadcast %cst_45 : f32 to vector<16x1xf32>
    %117 = arith.addf %113, %116 : vector<16x1xf32>
    %118 = math.rsqrt %117 : vector<16x1xf32>
    %119 = vector.broadcast %118 : vector<16x1xf32> to vector<16x32xf32>
    %120 = arith.mulf %115, %119 : vector<16x32xf32>
    %121 = vector.broadcast %100 : vector<1x32xf32> to vector<16x32xf32>
    %122 = arith.mulf %120, %121 : vector<16x32xf32>
    %123 = vector.broadcast %102 : vector<1x32xf32> to vector<16x32xf32>
    %124 = arith.addf %122, %123 : vector<16x32xf32>
    %c0_46 = arith.constant 0 : index
    %c0_47 = arith.constant 0 : index
    %c0_48 = arith.constant 0 : index
    %125 = vector.load %arg7[%c0_46, %c0_47, %c0_48] : memref<2x32x64xf32, #tpu.memory_space<vmem>>, vector<1x32x64xf32>
    %126 = vector.shape_cast %125 : vector<1x32x64xf32> to vector<32x64xf32>
    %cst_49 = arith.constant dense<0.000000e+00> : vector<16x64xf32>
    %127 = tpu.matmul %124, %126, %cst_49 {dimension_numbers = #tpu.dot_dimension_numbers<[1], [0], [0], [1], [0, 0, 1, 1], [], []>} : vector<16x32xf32>, vector<32x64xf32>, vector<16x64xf32> -> vector<16x64xf32>
    %c0_50 = arith.constant 0 : index
    %c0_51 = arith.constant 0 : index
    %c0_52 = arith.constant 0 : index
    %128 = vector.load %arg8[%c0_50, %c0_51, %c0_52] : memref<2x1x64xf32, #tpu.memory_space<vmem>>, vector<1x1x64xf32>
    %129 = vector.shape_cast %128 : vector<1x1x64xf32> to vector<1x64xf32>
    %130 = vector.broadcast %129 : vector<1x64xf32> to vector<16x64xf32>
    %131 = arith.addf %127, %130 : vector<16x64xf32>
    %cst_53 = arith.constant 0.000000e+00 : f32
    %132 = vector.broadcast %cst_53 : f32 to vector<16x64xf32>
    %133 = arith.maximumf %131, %132 : vector<16x64xf32>
    %c0_54 = arith.constant 0 : index
    %c0_55 = arith.constant 0 : index
    %c0_56 = arith.constant 0 : index
    %134 = vector.load %arg9[%c0_54, %c0_55, %c0_56] : memref<2x64x32xf32, #tpu.memory_space<vmem>>, vector<1x64x32xf32>
    %135 = vector.shape_cast %134 : vector<1x64x32xf32> to vector<64x32xf32>
    %cst_57 = arith.constant dense<0.000000e+00> : vector<16x32xf32>
    %136 = tpu.matmul %133, %135, %cst_57 {dimension_numbers = #tpu.dot_dimension_numbers<[1], [0], [0], [1], [0, 0, 1, 1], [], []>} : vector<16x64xf32>, vector<64x32xf32>, vector<16x32xf32> -> vector<16x32xf32>
    %c0_58 = arith.constant 0 : index
    %c0_59 = arith.constant 0 : index
    %c0_60 = arith.constant 0 : index
    %137 = vector.load %arg10[%c0_58, %c0_59, %c0_60] : memref<2x1x32xf32, #tpu.memory_space<vmem>>, vector<1x1x32xf32>
    %138 = vector.shape_cast %137 : vector<1x1x32xf32> to vector<1x32xf32>
    %139 = vector.broadcast %138 : vector<1x32xf32> to vector<16x32xf32>
    %140 = arith.addf %136, %139 : vector<16x32xf32>
    %141 = arith.addf %124, %140 : vector<16x32xf32>
    %c0_61 = arith.constant 0 : index
    %c0_62 = arith.constant 0 : index
    %c0_63 = arith.constant 0 : index
    %142 = vector.load %arg11[%c0_61, %c0_62, %c0_63] : memref<2x1x32xf32, #tpu.memory_space<vmem>>, vector<1x1x32xf32>
    %143 = vector.shape_cast %142 : vector<1x1x32xf32> to vector<1x32xf32>
    %c0_64 = arith.constant 0 : index
    %c0_65 = arith.constant 0 : index
    %c0_66 = arith.constant 0 : index
    %144 = vector.load %arg12[%c0_64, %c0_65, %c0_66] : memref<2x1x32xf32, #tpu.memory_space<vmem>>, vector<1x1x32xf32>
    %145 = vector.shape_cast %144 : vector<1x1x32xf32> to vector<1x32xf32>
    %cst_67 = arith.constant dense<0.000000e+00> : vector<16xf32>
    %146 = vector.multi_reduction <add>, %141, %cst_67 [1] : vector<16x32xf32> to vector<16xf32>
    %147 = vector.shape_cast %146 : vector<16xf32> to vector<16x1xf32>
    %cst_68 = arith.constant 3.200000e+01 : f32
    %148 = vector.broadcast %cst_68 : f32 to vector<16x1xf32>
    %149 = arith.divf %147, %148 : vector<16x1xf32>
    %150 = vector.broadcast %149 : vector<16x1xf32> to vector<16x32xf32>
    %151 = arith.subf %141, %150 : vector<16x32xf32>
    %152 = arith.mulf %151, %151 : vector<16x32xf32>
    %cst_69 = arith.constant dense<0.000000e+00> : vector<16xf32>
    %153 = vector.multi_reduction <add>, %152, %cst_69 [1] : vector<16x32xf32> to vector<16xf32>
    %154 = vector.shape_cast %153 : vector<16xf32> to vector<16x1xf32>
    %cst_70 = arith.constant 3.200000e+01 : f32
    %155 = vector.broadcast %cst_70 : f32 to vector<16x1xf32>
    %156 = arith.divf %154, %155 : vector<16x1xf32>
    %157 = vector.broadcast %149 : vector<16x1xf32> to vector<16x32xf32>
    %158 = arith.subf %141, %157 : vector<16x32xf32>
    %cst_71 = arith.constant 9.99999974E-6 : f32
    %159 = vector.broadcast %cst_71 : f32 to vector<16x1xf32>
    %160 = arith.addf %156, %159 : vector<16x1xf32>
    %161 = math.rsqrt %160 : vector<16x1xf32>
    %162 = vector.broadcast %161 : vector<16x1xf32> to vector<16x32xf32>
    %163 = arith.mulf %158, %162 : vector<16x32xf32>
    %164 = vector.broadcast %143 : vector<1x32xf32> to vector<16x32xf32>
    %165 = arith.mulf %163, %164 : vector<16x32xf32>
    %166 = vector.broadcast %145 : vector<1x32xf32> to vector<16x32xf32>
    %167 = arith.addf %165, %166 : vector<16x32xf32>
    %c1 = arith.constant 1 : index
    %c0_72 = arith.constant 0 : index
    %c0_73 = arith.constant 0 : index
    %168 = vector.load %arg1[%c1, %c0_72, %c0_73] : memref<2x32x96xf32, #tpu.memory_space<vmem>>, vector<1x32x96xf32>
    %169 = vector.shape_cast %168 : vector<1x32x96xf32> to vector<32x96xf32>
    %cst_74 = arith.constant dense<0.000000e+00> : vector<16x96xf32>
    %170 = tpu.matmul %167, %169, %cst_74 {dimension_numbers = #tpu.dot_dimension_numbers<[1], [0], [0], [1], [0, 0, 1, 1], [], []>} : vector<16x32xf32>, vector<32x96xf32>, vector<16x96xf32> -> vector<16x96xf32>
    %c1_75 = arith.constant 1 : index
    %c0_76 = arith.constant 0 : index
    %c0_77 = arith.constant 0 : index
    %171 = vector.load %arg2[%c1_75, %c0_76, %c0_77] : memref<2x1x96xf32, #tpu.memory_space<vmem>>, vector<1x1x96xf32>
    %172 = vector.shape_cast %171 : vector<1x1x96xf32> to vector<1x96xf32>
    %173 = vector.broadcast %172 : vector<1x96xf32> to vector<16x96xf32>
    %174 = arith.addf %170, %173 : vector<16x96xf32>
    %175 = vector.extract_strided_slice %174 {offsets = [0, 0], sizes = [16, 32], strides = [1, 1]} : vector<16x96xf32> to vector<16x32xf32>
    %176 = vector.shape_cast %175 : vector<16x32xf32> to vector<2x8x32xf32>
    %177 = vector.extract_strided_slice %174 {offsets = [0, 32], sizes = [16, 32], strides = [1, 1]} : vector<16x96xf32> to vector<16x32xf32>
    %178 = vector.shape_cast %177 : vector<16x32xf32> to vector<2x8x32xf32>
    %179 = vector.extract_strided_slice %174 {offsets = [0, 64], sizes = [16, 32], strides = [1, 1]} : vector<16x96xf32> to vector<16x32xf32>
    %180 = vector.shape_cast %179 : vector<16x32xf32> to vector<2x8x32xf32>
    %c1_78 = arith.constant 1 : index
    %c0_79 = arith.constant 0 : index
    %c0_80 = arith.constant 0 : index
    %181 = vector.load %arg3[%c1_78, %c0_79, %c0_80] : memref<2x32x32xf32, #tpu.memory_space<vmem>>, vector<1x32x32xf32>
    %182 = vector.shape_cast %181 : vector<1x32x32xf32> to vector<32x32xf32>
    %cst_81 = arith.constant 0.000000e+00 : f32
    %183 = vector.broadcast %cst_81 : f32 to vector<16x32xf32>
    %184 = vector.extract_strided_slice %176 {offsets = [0, 0, 0], sizes = [2, 8, 8], strides = [1, 1, 1]} : vector<2x8x32xf32> to vector<2x8x8xf32>
    %185 = vector.extract_strided_slice %178 {offsets = [0, 0, 0], sizes = [2, 8, 8], strides = [1, 1, 1]} : vector<2x8x32xf32> to vector<2x8x8xf32>
    %186 = vector.extract_strided_slice %180 {offsets = [0, 0, 0], sizes = [2, 8, 8], strides = [1, 1, 1]} : vector<2x8x32xf32> to vector<2x8x8xf32>
    "tpu.trace_start"() <{level = 10 : i32, message = "bqd,bkd->bqk"}> : () -> ()
    %cst_82 = arith.constant dense<0.000000e+00> : vector<2x8x8xf32>
    %187 = tpu.matmul %184, %185, %cst_82 {dimension_numbers = #tpu.dot_dimension_numbers<[2], [2], [1], [1], [0, 0, 0, 1, 1, 1], [0], [0]>} : vector<2x8x8xf32>, vector<2x8x8xf32>, vector<2x8x8xf32> -> vector<2x8x8xf32>
    "tpu.trace_stop"() : () -> ()
    %cst_83 = arith.constant dense<0xFF800000> : vector<2x8xf32>
    %188 = vector.multi_reduction <maximumf>, %187, %cst_83 [2] : vector<2x8x8xf32> to vector<2x8xf32>
    %189 = vector.shape_cast %188 : vector<2x8xf32> to vector<2x8x1xf32>
    %190 = vector.broadcast %189 : vector<2x8x1xf32> to vector<2x8x8xf32>
    %191 = arith.subf %187, %190 : vector<2x8x8xf32>
    %192 = math.exp %191 : vector<2x8x8xf32>
    %cst_84 = arith.constant dense<0.000000e+00> : vector<2x8xf32>
    %193 = vector.multi_reduction <add>, %192, %cst_84 [2] : vector<2x8x8xf32> to vector<2x8xf32>
    %194 = vector.shape_cast %193 : vector<2x8xf32> to vector<2x8x1xf32>
    %195 = tpu.reciprocal %194 {approx = true} : vector<2x8x1xf32> -> vector<2x8x1xf32>
    %196 = vector.broadcast %195 : vector<2x8x1xf32> to vector<2x8x8xf32>
    %197 = arith.mulf %192, %196 : vector<2x8x8xf32>
    "tpu.trace_start"() <{level = 10 : i32, message = "bqk,bkd->bqd"}> : () -> ()
    %cst_85 = arith.constant dense<0.000000e+00> : vector<2x8x8xf32>
    %198 = tpu.matmul %197, %186, %cst_85 {dimension_numbers = #tpu.dot_dimension_numbers<[2], [1], [1], [2], [0, 0, 0, 1, 1, 2], [0], [0]>} : vector<2x8x8xf32>, vector<2x8x8xf32>, vector<2x8x8xf32> -> vector<2x8x8xf32>
    "tpu.trace_stop"() : () -> ()
    %199 = vector.shape_cast %198 : vector<2x8x8xf32> to vector<16x8xf32>
    %200 = vector.extract_strided_slice %182 {offsets = [0, 0], sizes = [8, 32], strides = [1, 1]} : vector<32x32xf32> to vector<8x32xf32>
    %cst_86 = arith.constant dense<0.000000e+00> : vector<16x32xf32>
    %201 = tpu.matmul %199, %200, %cst_86 {dimension_numbers = #tpu.dot_dimension_numbers<[1], [0], [0], [1], [0, 0, 1, 1], [], []>} : vector<16x8xf32>, vector<8x32xf32>, vector<16x32xf32> -> vector<16x32xf32>
    %202 = arith.addf %183, %201 : vector<16x32xf32>
    %203 = vector.extract_strided_slice %176 {offsets = [0, 0, 8], sizes = [2, 8, 8], strides = [1, 1, 1]} : vector<2x8x32xf32> to vector<2x8x8xf32>
    %204 = vector.extract_strided_slice %178 {offsets = [0, 0, 8], sizes = [2, 8, 8], strides = [1, 1, 1]} : vector<2x8x32xf32> to vector<2x8x8xf32>
    %205 = vector.extract_strided_slice %180 {offsets = [0, 0, 8], sizes = [2, 8, 8], strides = [1, 1, 1]} : vector<2x8x32xf32> to vector<2x8x8xf32>
    "tpu.trace_start"() <{level = 10 : i32, message = "bqd,bkd->bqk"}> : () -> ()
    %cst_87 = arith.constant dense<0.000000e+00> : vector<2x8x8xf32>
    %206 = tpu.matmul %203, %204, %cst_87 {dimension_numbers = #tpu.dot_dimension_numbers<[2], [2], [1], [1], [0, 0, 0, 1, 1, 1], [0], [0]>} : vector<2x8x8xf32>, vector<2x8x8xf32>, vector<2x8x8xf32> -> vector<2x8x8xf32>
    "tpu.trace_stop"() : () -> ()
    %cst_88 = arith.constant dense<0xFF800000> : vector<2x8xf32>
    %207 = vector.multi_reduction <maximumf>, %206, %cst_88 [2] : vector<2x8x8xf32> to vector<2x8xf32>
    %208 = vector.shape_cast %207 : vector<2x8xf32> to vector<2x8x1xf32>
    %209 = vector.broadcast %208 : vector<2x8x1xf32> to vector<2x8x8xf32>
    %210 = arith.subf %206, %209 : vector<2x8x8xf32>
    %211 = math.exp %210 : vector<2x8x8xf32>
    %cst_89 = arith.constant dense<0.000000e+00> : vector<2x8xf32>
    %212 = vector.multi_reduction <add>, %211, %cst_89 [2] : vector<2x8x8xf32> to vector<2x8xf32>
    %213 = vector.shape_cast %212 : vector<2x8xf32> to vector<2x8x1xf32>
    %214 = tpu.reciprocal %213 {approx = true} : vector<2x8x1xf32> -> vector<2x8x1xf32>
    %215 = vector.broadcast %214 : vector<2x8x1xf32> to vector<2x8x8xf32>
    %216 = arith.mulf %211, %215 : vector<2x8x8xf32>
    "tpu.trace_start"() <{level = 10 : i32, message = "bqk,bkd->bqd"}> : () -> ()
    %cst_90 = arith.constant dense<0.000000e+00> : vector<2x8x8xf32>
    %217 = tpu.matmul %216, %205, %cst_90 {dimension_numbers = #tpu.dot_dimension_numbers<[2], [1], [1], [2], [0, 0, 0, 1, 1, 2], [0], [0]>} : vector<2x8x8xf32>, vector<2x8x8xf32>, vector<2x8x8xf32> -> vector<2x8x8xf32>
    "tpu.trace_stop"() : () -> ()
    %218 = vector.shape_cast %217 : vector<2x8x8xf32> to vector<16x8xf32>
    %219 = vector.extract_strided_slice %182 {offsets = [8, 0], sizes = [8, 32], strides = [1, 1]} : vector<32x32xf32> to vector<8x32xf32>
    %cst_91 = arith.constant dense<0.000000e+00> : vector<16x32xf32>
    %220 = tpu.matmul %218, %219, %cst_91 {dimension_numbers = #tpu.dot_dimension_numbers<[1], [0], [0], [1], [0, 0, 1, 1], [], []>} : vector<16x8xf32>, vector<8x32xf32>, vector<16x32xf32> -> vector<16x32xf32>
    %221 = arith.addf %202, %220 : vector<16x32xf32>
    %222 = vector.extract_strided_slice %176 {offsets = [0, 0, 16], sizes = [2, 8, 8], strides = [1, 1, 1]} : vector<2x8x32xf32> to vector<2x8x8xf32>
    %223 = vector.extract_strided_slice %178 {offsets = [0, 0, 16], sizes = [2, 8, 8], strides = [1, 1, 1]} : vector<2x8x32xf32> to vector<2x8x8xf32>
    %224 = vector.extract_strided_slice %180 {offsets = [0, 0, 16], sizes = [2, 8, 8], strides = [1, 1, 1]} : vector<2x8x32xf32> to vector<2x8x8xf32>
    "tpu.trace_start"() <{level = 10 : i32, message = "bqd,bkd->bqk"}> : () -> ()
    %cst_92 = arith.constant dense<0.000000e+00> : vector<2x8x8xf32>
    %225 = tpu.matmul %222, %223, %cst_92 {dimension_numbers = #tpu.dot_dimension_numbers<[2], [2], [1], [1], [0, 0, 0, 1, 1, 1], [0], [0]>} : vector<2x8x8xf32>, vector<2x8x8xf32>, vector<2x8x8xf32> -> vector<2x8x8xf32>
    "tpu.trace_stop"() : () -> ()
    %cst_93 = arith.constant dense<0xFF800000> : vector<2x8xf32>
    %226 = vector.multi_reduction <maximumf>, %225, %cst_93 [2] : vector<2x8x8xf32> to vector<2x8xf32>
    %227 = vector.shape_cast %226 : vector<2x8xf32> to vector<2x8x1xf32>
    %228 = vector.broadcast %227 : vector<2x8x1xf32> to vector<2x8x8xf32>
    %229 = arith.subf %225, %228 : vector<2x8x8xf32>
    %230 = math.exp %229 : vector<2x8x8xf32>
    %cst_94 = arith.constant dense<0.000000e+00> : vector<2x8xf32>
    %231 = vector.multi_reduction <add>, %230, %cst_94 [2] : vector<2x8x8xf32> to vector<2x8xf32>
    %232 = vector.shape_cast %231 : vector<2x8xf32> to vector<2x8x1xf32>
    %233 = tpu.reciprocal %232 {approx = true} : vector<2x8x1xf32> -> vector<2x8x1xf32>
    %234 = vector.broadcast %233 : vector<2x8x1xf32> to vector<2x8x8xf32>
    %235 = arith.mulf %230, %234 : vector<2x8x8xf32>
    "tpu.trace_start"() <{level = 10 : i32, message = "bqk,bkd->bqd"}> : () -> ()
    %cst_95 = arith.constant dense<0.000000e+00> : vector<2x8x8xf32>
    %236 = tpu.matmul %235, %224, %cst_95 {dimension_numbers = #tpu.dot_dimension_numbers<[2], [1], [1], [2], [0, 0, 0, 1, 1, 2], [0], [0]>} : vector<2x8x8xf32>, vector<2x8x8xf32>, vector<2x8x8xf32> -> vector<2x8x8xf32>
    "tpu.trace_stop"() : () -> ()
    %237 = vector.shape_cast %236 : vector<2x8x8xf32> to vector<16x8xf32>
    %238 = vector.extract_strided_slice %182 {offsets = [16, 0], sizes = [8, 32], strides = [1, 1]} : vector<32x32xf32> to vector<8x32xf32>
    %cst_96 = arith.constant dense<0.000000e+00> : vector<16x32xf32>
    %239 = tpu.matmul %237, %238, %cst_96 {dimension_numbers = #tpu.dot_dimension_numbers<[1], [0], [0], [1], [0, 0, 1, 1], [], []>} : vector<16x8xf32>, vector<8x32xf32>, vector<16x32xf32> -> vector<16x32xf32>
    %240 = arith.addf %221, %239 : vector<16x32xf32>
    %241 = vector.extract_strided_slice %176 {offsets = [0, 0, 24], sizes = [2, 8, 8], strides = [1, 1, 1]} : vector<2x8x32xf32> to vector<2x8x8xf32>
    %242 = vector.extract_strided_slice %178 {offsets = [0, 0, 24], sizes = [2, 8, 8], strides = [1, 1, 1]} : vector<2x8x32xf32> to vector<2x8x8xf32>
    %243 = vector.extract_strided_slice %180 {offsets = [0, 0, 24], sizes = [2, 8, 8], strides = [1, 1, 1]} : vector<2x8x32xf32> to vector<2x8x8xf32>
    "tpu.trace_start"() <{level = 10 : i32, message = "bqd,bkd->bqk"}> : () -> ()
    %cst_97 = arith.constant dense<0.000000e+00> : vector<2x8x8xf32>
    %244 = tpu.matmul %241, %242, %cst_97 {dimension_numbers = #tpu.dot_dimension_numbers<[2], [2], [1], [1], [0, 0, 0, 1, 1, 1], [0], [0]>} : vector<2x8x8xf32>, vector<2x8x8xf32>, vector<2x8x8xf32> -> vector<2x8x8xf32>
    "tpu.trace_stop"() : () -> ()
    %cst_98 = arith.constant dense<0xFF800000> : vector<2x8xf32>
    %245 = vector.multi_reduction <maximumf>, %244, %cst_98 [2] : vector<2x8x8xf32> to vector<2x8xf32>
    %246 = vector.shape_cast %245 : vector<2x8xf32> to vector<2x8x1xf32>
    %247 = vector.broadcast %246 : vector<2x8x1xf32> to vector<2x8x8xf32>
    %248 = arith.subf %244, %247 : vector<2x8x8xf32>
    %249 = math.exp %248 : vector<2x8x8xf32>
    %cst_99 = arith.constant dense<0.000000e+00> : vector<2x8xf32>
    %250 = vector.multi_reduction <add>, %249, %cst_99 [2] : vector<2x8x8xf32> to vector<2x8xf32>
    %251 = vector.shape_cast %250 : vector<2x8xf32> to vector<2x8x1xf32>
    %252 = tpu.reciprocal %251 {approx = true} : vector<2x8x1xf32> -> vector<2x8x1xf32>
    %253 = vector.broadcast %252 : vector<2x8x1xf32> to vector<2x8x8xf32>
    %254 = arith.mulf %249, %253 : vector<2x8x8xf32>
    "tpu.trace_start"() <{level = 10 : i32, message = "bqk,bkd->bqd"}> : () -> ()
    %cst_100 = arith.constant dense<0.000000e+00> : vector<2x8x8xf32>
    %255 = tpu.matmul %254, %243, %cst_100 {dimension_numbers = #tpu.dot_dimension_numbers<[2], [1], [1], [2], [0, 0, 0, 1, 1, 2], [0], [0]>} : vector<2x8x8xf32>, vector<2x8x8xf32>, vector<2x8x8xf32> -> vector<2x8x8xf32>
    "tpu.trace_stop"() : () -> ()
    %256 = vector.shape_cast %255 : vector<2x8x8xf32> to vector<16x8xf32>
    %257 = vector.extract_strided_slice %182 {offsets = [24, 0], sizes = [8, 32], strides = [1, 1]} : vector<32x32xf32> to vector<8x32xf32>
    %cst_101 = arith.constant dense<0.000000e+00> : vector<16x32xf32>
    %258 = tpu.matmul %256, %257, %cst_101 {dimension_numbers = #tpu.dot_dimension_numbers<[1], [0], [0], [1], [0, 0, 1, 1], [], []>} : vector<16x8xf32>, vector<8x32xf32>, vector<16x32xf32> -> vector<16x32xf32>
    %259 = arith.addf %240, %258 : vector<16x32xf32>
    %c1_102 = arith.constant 1 : index
    %c0_103 = arith.constant 0 : index
    %c0_104 = arith.constant 0 : index
    %260 = vector.load %arg4[%c1_102, %c0_103, %c0_104] : memref<2x1x32xf32, #tpu.memory_space<vmem>>, vector<1x1x32xf32>
    %261 = vector.shape_cast %260 : vector<1x1x32xf32> to vector<1x32xf32>
    %262 = vector.broadcast %261 : vector<1x32xf32> to vector<16x32xf32>
    %263 = arith.addf %259, %262 : vector<16x32xf32>
    %264 = arith.addf %167, %263 : vector<16x32xf32>
    %c1_105 = arith.constant 1 : index
    %c0_106 = arith.constant 0 : index
    %c0_107 = arith.constant 0 : index
    %265 = vector.load %arg5[%c1_105, %c0_106, %c0_107] : memref<2x1x32xf32, #tpu.memory_space<vmem>>, vector<1x1x32xf32>
    %266 = vector.shape_cast %265 : vector<1x1x32xf32> to vector<1x32xf32>
    %c1_108 = arith.constant 1 : index
    %c0_109 = arith.constant 0 : index
    %c0_110 = arith.constant 0 : index
    %267 = vector.load %arg6[%c1_108, %c0_109, %c0_110] : memref<2x1x32xf32, #tpu.memory_space<vmem>>, vector<1x1x32xf32>
    %268 = vector.shape_cast %267 : vector<1x1x32xf32> to vector<1x32xf32>
    %cst_111 = arith.constant dense<0.000000e+00> : vector<16xf32>
    %269 = vector.multi_reduction <add>, %264, %cst_111 [1] : vector<16x32xf32> to vector<16xf32>
    %270 = vector.shape_cast %269 : vector<16xf32> to vector<16x1xf32>
    %cst_112 = arith.constant 3.200000e+01 : f32
    %271 = vector.broadcast %cst_112 : f32 to vector<16x1xf32>
    %272 = arith.divf %270, %271 : vector<16x1xf32>
    %273 = vector.broadcast %272 : vector<16x1xf32> to vector<16x32xf32>
    %274 = arith.subf %264, %273 : vector<16x32xf32>
    %275 = arith.mulf %274, %274 : vector<16x32xf32>
    %cst_113 = arith.constant dense<0.000000e+00> : vector<16xf32>
    %276 = vector.multi_reduction <add>, %275, %cst_113 [1] : vector<16x32xf32> to vector<16xf32>
    %277 = vector.shape_cast %276 : vector<16xf32> to vector<16x1xf32>
    %cst_114 = arith.constant 3.200000e+01 : f32
    %278 = vector.broadcast %cst_114 : f32 to vector<16x1xf32>
    %279 = arith.divf %277, %278 : vector<16x1xf32>
    %280 = vector.broadcast %272 : vector<16x1xf32> to vector<16x32xf32>
    %281 = arith.subf %264, %280 : vector<16x32xf32>
    %cst_115 = arith.constant 9.99999974E-6 : f32
    %282 = vector.broadcast %cst_115 : f32 to vector<16x1xf32>
    %283 = arith.addf %279, %282 : vector<16x1xf32>
    %284 = math.rsqrt %283 : vector<16x1xf32>
    %285 = vector.broadcast %284 : vector<16x1xf32> to vector<16x32xf32>
    %286 = arith.mulf %281, %285 : vector<16x32xf32>
    %287 = vector.broadcast %266 : vector<1x32xf32> to vector<16x32xf32>
    %288 = arith.mulf %286, %287 : vector<16x32xf32>
    %289 = vector.broadcast %268 : vector<1x32xf32> to vector<16x32xf32>
    %290 = arith.addf %288, %289 : vector<16x32xf32>
    %c1_116 = arith.constant 1 : index
    %c0_117 = arith.constant 0 : index
    %c0_118 = arith.constant 0 : index
    %291 = vector.load %arg7[%c1_116, %c0_117, %c0_118] : memref<2x32x64xf32, #tpu.memory_space<vmem>>, vector<1x32x64xf32>
    %292 = vector.shape_cast %291 : vector<1x32x64xf32> to vector<32x64xf32>
    %cst_119 = arith.constant dense<0.000000e+00> : vector<16x64xf32>
    %293 = tpu.matmul %290, %292, %cst_119 {dimension_numbers = #tpu.dot_dimension_numbers<[1], [0], [0], [1], [0, 0, 1, 1], [], []>} : vector<16x32xf32>, vector<32x64xf32>, vector<16x64xf32> -> vector<16x64xf32>
    %c1_120 = arith.constant 1 : index
    %c0_121 = arith.constant 0 : index
    %c0_122 = arith.constant 0 : index
    %294 = vector.load %arg8[%c1_120, %c0_121, %c0_122] : memref<2x1x64xf32, #tpu.memory_space<vmem>>, vector<1x1x64xf32>
    %295 = vector.shape_cast %294 : vector<1x1x64xf32> to vector<1x64xf32>
    %296 = vector.broadcast %295 : vector<1x64xf32> to vector<16x64xf32>
    %297 = arith.addf %293, %296 : vector<16x64xf32>
    %cst_123 = arith.constant 0.000000e+00 : f32
    %298 = vector.broadcast %cst_123 : f32 to vector<16x64xf32>
    %299 = arith.maximumf %297, %298 : vector<16x64xf32>
    %c1_124 = arith.constant 1 : index
    %c0_125 = arith.constant 0 : index
    %c0_126 = arith.constant 0 : index
    %300 = vector.load %arg9[%c1_124, %c0_125, %c0_126] : memref<2x64x32xf32, #tpu.memory_space<vmem>>, vector<1x64x32xf32>
    %301 = vector.shape_cast %300 : vector<1x64x32xf32> to vector<64x32xf32>
    %cst_127 = arith.constant dense<0.000000e+00> : vector<16x32xf32>
    %302 = tpu.matmul %299, %301, %cst_127 {dimension_numbers = #tpu.dot_dimension_numbers<[1], [0], [0], [1], [0, 0, 1, 1], [], []>} : vector<16x64xf32>, vector<64x32xf32>, vector<16x32xf32> -> vector<16x32xf32>
    %c1_128 = arith.constant 1 : index
    %c0_129 = arith.constant 0 : index
    %c0_130 = arith.constant 0 : index
    %303 = vector.load %arg10[%c1_128, %c0_129, %c0_130] : memref<2x1x32xf32, #tpu.memory_space<vmem>>, vector<1x1x32xf32>
    %304 = vector.shape_cast %303 : vector<1x1x32xf32> to vector<1x32xf32>
    %305 = vector.broadcast %304 : vector<1x32xf32> to vector<16x32xf32>
    %306 = arith.addf %302, %305 : vector<16x32xf32>
    %307 = arith.addf %290, %306 : vector<16x32xf32>
    %c1_131 = arith.constant 1 : index
    %c0_132 = arith.constant 0 : index
    %c0_133 = arith.constant 0 : index
    %308 = vector.load %arg11[%c1_131, %c0_132, %c0_133] : memref<2x1x32xf32, #tpu.memory_space<vmem>>, vector<1x1x32xf32>
    %309 = vector.shape_cast %308 : vector<1x1x32xf32> to vector<1x32xf32>
    %c1_134 = arith.constant 1 : index
    %c0_135 = arith.constant 0 : index
    %c0_136 = arith.constant 0 : index
    %310 = vector.load %arg12[%c1_134, %c0_135, %c0_136] : memref<2x1x32xf32, #tpu.memory_space<vmem>>, vector<1x1x32xf32>
    %311 = vector.shape_cast %310 : vector<1x1x32xf32> to vector<1x32xf32>
    %cst_137 = arith.constant dense<0.000000e+00> : vector<16xf32>
    %312 = vector.multi_reduction <add>, %307, %cst_137 [1] : vector<16x32xf32> to vector<16xf32>
    %313 = vector.shape_cast %312 : vector<16xf32> to vector<16x1xf32>
    %cst_138 = arith.constant 3.200000e+01 : f32
    %314 = vector.broadcast %cst_138 : f32 to vector<16x1xf32>
    %315 = arith.divf %313, %314 : vector<16x1xf32>
    %316 = vector.broadcast %315 : vector<16x1xf32> to vector<16x32xf32>
    %317 = arith.subf %307, %316 : vector<16x32xf32>
    %318 = arith.mulf %317, %317 : vector<16x32xf32>
    %cst_139 = arith.constant dense<0.000000e+00> : vector<16xf32>
    %319 = vector.multi_reduction <add>, %318, %cst_139 [1] : vector<16x32xf32> to vector<16xf32>
    %320 = vector.shape_cast %319 : vector<16xf32> to vector<16x1xf32>
    %cst_140 = arith.constant 3.200000e+01 : f32
    %321 = vector.broadcast %cst_140 : f32 to vector<16x1xf32>
    %322 = arith.divf %320, %321 : vector<16x1xf32>
    %323 = vector.broadcast %315 : vector<16x1xf32> to vector<16x32xf32>
    %324 = arith.subf %307, %323 : vector<16x32xf32>
    %cst_141 = arith.constant 9.99999974E-6 : f32
    %325 = vector.broadcast %cst_141 : f32 to vector<16x1xf32>
    %326 = arith.addf %322, %325 : vector<16x1xf32>
    %327 = math.rsqrt %326 : vector<16x1xf32>
    %328 = vector.broadcast %327 : vector<16x1xf32> to vector<16x32xf32>
    %329 = arith.mulf %324, %328 : vector<16x32xf32>
    %330 = vector.broadcast %309 : vector<1x32xf32> to vector<16x32xf32>
    %331 = arith.mulf %329, %330 : vector<16x32xf32>
    %332 = vector.broadcast %311 : vector<1x32xf32> to vector<16x32xf32>
    %333 = arith.addf %331, %332 : vector<16x32xf32>
    %334 = vector.shape_cast %333 : vector<16x32xf32> to vector<2x8x32xf32>
    %335 = vector.extract_strided_slice %334 {offsets = [0, 0, 0], sizes = [2, 1, 32], strides = [1, 1, 1]} : vector<2x8x32xf32> to vector<2x1x32xf32>
    %336 = vector.shape_cast %335 : vector<2x1x32xf32> to vector<2x32xf32>
    %c0_142 = arith.constant 0 : index
    %c0_143 = arith.constant 0 : index
    %337 = vector.load %arg13[%c0_142, %c0_143] : memref<1x32xf32, #tpu.memory_space<vmem>>, vector<1x32xf32>
    %c0_144 = arith.constant 0 : index
    %c0_145 = arith.constant 0 : index
    %338 = vector.load %arg14[%c0_144, %c0_145] : memref<1x32xf32, #tpu.memory_space<vmem>>, vector<1x32xf32>
    %cst_146 = arith.constant dense<0.000000e+00> : vector<2xf32>
    %339 = vector.multi_reduction <add>, %336, %cst_146 [1] : vector<2x32xf32> to vector<2xf32>
    %340 = vector.shape_cast %339 : vector<2xf32> to vector<2x1xf32>
    %cst_147 = arith.constant 3.200000e+01 : f32
    %341 = vector.broadcast %cst_147 : f32 to vector<2x1xf32>
    %342 = arith.divf %340, %341 : vector<2x1xf32>
    %343 = vector.broadcast %342 : vector<2x1xf32> to vector<2x32xf32>
    %344 = arith.subf %336, %343 : vector<2x32xf32>
    %345 = arith.mulf %344, %344 : vector<2x32xf32>
    %cst_148 = arith.constant dense<0.000000e+00> : vector<2xf32>
    %346 = vector.multi_reduction <add>, %345, %cst_148 [1] : vector<2x32xf32> to vector<2xf32>
    %347 = vector.shape_cast %346 : vector<2xf32> to vector<2x1xf32>
    %cst_149 = arith.constant 3.200000e+01 : f32
    %348 = vector.broadcast %cst_149 : f32 to vector<2x1xf32>
    %349 = arith.divf %347, %348 : vector<2x1xf32>
    %350 = vector.broadcast %342 : vector<2x1xf32> to vector<2x32xf32>
    %351 = arith.subf %336, %350 : vector<2x32xf32>
    %cst_150 = arith.constant 9.99999974E-6 : f32
    %352 = vector.broadcast %cst_150 : f32 to vector<2x1xf32>
    %353 = arith.addf %349, %352 : vector<2x1xf32>
    %354 = math.rsqrt %353 : vector<2x1xf32>
    %355 = vector.broadcast %354 : vector<2x1xf32> to vector<2x32xf32>
    %356 = arith.mulf %351, %355 : vector<2x32xf32>
    %357 = vector.broadcast %337 : vector<1x32xf32> to vector<2x32xf32>
    %358 = arith.mulf %356, %357 : vector<2x32xf32>
    %359 = vector.broadcast %338 : vector<1x32xf32> to vector<2x32xf32>
    %360 = arith.addf %358, %359 : vector<2x32xf32>
    %c0_151 = arith.constant 0 : index
    %c0_152 = arith.constant 0 : index
    %361 = vector.load %arg15[%c0_151, %c0_152] : memref<32x16xf32, #tpu.memory_space<vmem>>, vector<32x16xf32>
    %cst_153 = arith.constant dense<0.000000e+00> : vector<2x16xf32>
    %362 = tpu.matmul %360, %361, %cst_153 {dimension_numbers = #tpu.dot_dimension_numbers<[1], [0], [0], [1], [0, 0, 1, 1], [], []>} : vector<2x32xf32>, vector<32x16xf32>, vector<2x16xf32> -> vector<2x16xf32>
    %c0_154 = arith.constant 0 : index
    %c0_155 = arith.constant 0 : index
    %363 = vector.load %arg16[%c0_154, %c0_155] : memref<1x16xf32, #tpu.memory_space<vmem>>, vector<1x16xf32>
    %364 = vector.broadcast %363 : vector<1x16xf32> to vector<2x16xf32>
    %365 = arith.addf %362, %364 : vector<2x16xf32>
    %c0_156 = arith.constant 0 : index
    %c0_157 = arith.constant 0 : index
    %366 = vector.load %arg17[%c0_156, %c0_157] : memref<2x16xf32, #tpu.memory_space<vmem>>, vector<2x16xf32>
    tpu.vector_store %arg17[%c0_156, %c0_157], %365 {strides = array<i32>} : memref<2x16xf32, #tpu.memory_space<vmem>>, vector<2x16xf32>,
    return
  }
}

</mosaic_0001>

<bundles_post_ra>
// kernel: tpu_custom_call.1
= control target key start
LH: loop header
LB: loop body
LE: loop exit
PB: predicated region body
PF: predicated region fallthrough
CT: control target
= control target key end

     0   :  { %s5902_s0 = inlined_call_operand.hbm [shape: f32[2,8,32], index: 0, kind: input, shape index: {}]   ;;  %s5903_s1 = inlined_call_operand.vmem [shape: f32[2,32,96], index: 1, kind: input, shape index: {}]   ;;  %s5904_s2 = inlined_call_operand.hbm [shape: f32[2,1,96], index: 2, kind: input, shape index: {}]   ;;  %s5905_s3 = inlined_call_operand.vmem [shape: f32[2,32,32], index: 3, kind: input, shape index: {}]   ;;  %s5906_s4 = inlined_call_operand.hbm [shape: f32[2,1,32], index: 4, kind: input, shape index: {}]   ;;  %s5907_s5 = inlined_call_operand.hbm [shape: f32[2,1,32], index: 5, kind: input, shape index: {}]   ;;  %s5908_s6 = inlined_call_operand.hbm [shape: f32[2,1,32], index: 6, kind: input, shape index: {}]   ;;  %s5909_s7 = inlined_call_operand.vmem [shape: f32[2,32,64], index: 7, kind: input, shape index: {}]   ;;  %s5910_s8 = inlined_call_operand.hbm [shape: f32[2,1,64], index: 8, kind: input, shape index: {}]   ;;  %s5911_s9 = inlined_call_operand.vmem [shape: f32[2,64,32], index: 9, kind: input, shape index: {}]   ;;  %s5912_s10 = inlined_call_operand.vmem [shape: f32[2,1,32], index: 10, kind: input, shape index: {}]   ;;  %s5913_s11 = inlined_call_operand.hbm [shape: f32[2,1,32], index: 11, kind: input, shape index: {}]   ;;  %s5914_s12 = inlined_call_operand.vmem [shape: f32[2,1,32], index: 12, kind: input, shape index: {}]   ;;  %s5915_s13 = inlined_call_operand.vmem [shape: f32[1,32], index: 13, kind: input, shape index: {}]   ;;  %s5916_s14 = inlined_call_operand.vmem [shape: f32[1,32], index: 14, kind: input, shape index: {}]   ;;  %s5917_s15 = inlined_call_operand.vmem [shape: f32[32,16], index: 15, kind: input, shape index: {}]   ;;  %s5918_s16 = inlined_call_operand.vmem [shape: f32[1,16], index: 16, kind: input, shape index: {}]   ;;  %s5919_s17 = inlined_call_operand.hbm [shape: f32[2,16], index: 17, kind: output, shape index: {}]  }
   0x1   :  { %5921 = sst [smem:[#allocation20_spill]] %s5902_s0 }
   0x2   :  { %5922 = sst [smem:[#allocation21_spill]] %s5903_s1 }
   0x3   :  { %22 = vsyncpa [#allocation3], 0 }
   0x4   :  { %23 = vsyncpa [#allocation6], 0 }
   0x5   :  { %24 = vsyncpa [#allocation9], 0 }
   0x6   :  { %25 = vsyncpa [#allocation12], 0 }
   0x7   :  { %26 = vsyncpa [#allocation4], 0  ;;  %s5222_s24 = smov [#allocation5]  }
   0x8   :  { %s46_s25 = sshll.u32 %s5222_s24, 4  ;;  %s47_s25 = int_to_ptr.vmem [resolvable:$true] %s46_s25 }
   0x9   :  { %s5060_s26 = scalar_lea.vmem %s47_s25, 32  ;;  %p5065_p1 = scmp.lt.s32.totalorder %s47_s25, %s47_s25 }
   0xa   :  { %p5061_p0 = scmp.ne.s32.totalorder %s47_s25, %s5060_s26  ;;  %p5066_p2 = scmp.lt.s32.totalorder %s5060_s26, %s5060_s26 }
   0xc   :  { %p5067_p3 = por %p5066_p2, %p5065_p1 }
   0xe   :  { %p5068_p4 = pnand %p5067_p3, %p5061_p0 }
  0x10   :  { %5071 = shalt.err (!%p5068_p4)
}
  0x11   :  { %s5223_s27 = smov 16   ;;  %s5224_s28 = smov 1  }
  0x12   :  { %52 = dma.hbm_to_vmem [thread:$0]  %s5904_s2, 32, %s47_s25, [#allocation6], %s5223_s27, %s5223_s27, %s5224_s28  }
  0x13   :  { %s5225_s30 = smov [#allocation8]   ;;  %s5226_s19 = smov [#allocation11]  }
  0x14   :  { %s72_s18 = sshll.u32 %s5225_s30, 4  ;;  %s98_s1 = sshll.u32 %s5226_s19, 4  ;;  %s73_s18 = int_to_ptr.vmem [resolvable:$true] %s72_s18  ;;  %s99_s1 = int_to_ptr.vmem [resolvable:$true] %s98_s1 }
  0x15   :  { %s5080_s20 = scalar_lea.vmem %s73_s18, 32  ;;  %p5085_p6 = scmp.lt.s32.totalorder %s73_s18, %s73_s18 }
  0x16   :  { %p5081_p5 = scmp.ne.s32.totalorder %s73_s18, %s5080_s20  ;;  %p5086_p7 = scmp.lt.s32.totalorder %s5080_s20, %s5080_s20 }
  0x18   :  { %p5087_p8 = por %p5086_p7, %p5085_p6 }
  0x1a   :  { %p5088_p9 = pnand %p5087_p8, %p5081_p5 }
  0x1c   :  { %5091 = shalt.err (!%p5088_p9)
}
  0x1d   :  { %78 = dma.hbm_to_vmem [thread:$0]  %s5907_s5, 32, %s73_s18, [#allocation9], %s5223_s27, %s5223_s27, %s5224_s28  }
  0x1e   :  { %s5100_s2 = scalar_lea.vmem %s99_s1, 32  ;;  %p5105_p11 = scmp.lt.s32.totalorder %s99_s1, %s99_s1 }
  0x1f   :  { %p5101_p10 = scmp.ne.s32.totalorder %s99_s1, %s5100_s2  ;;  %p5106_p12 = scmp.lt.s32.totalorder %s5100_s2, %s5100_s2 }
  0x21   :  { %p5107_p13 = por %p5106_p12, %p5105_p11 }
  0x23   :  { %p5108_p0 = pnand %p5107_p13, %p5101_p10 }
  0x25   :  { %5111 = shalt.err (!%p5108_p0)
}
  0x26   :  { %104 = dma.hbm_to_vmem [thread:$0]  %s5910_s8, 32, %s99_s1, [#allocation12], %s5223_s27, %s5223_s27, %s5224_s28  }
  0x27   :  { %s5227_s25 = smov [#allocation2]  }
  0x28   :  { %s32_s26 = sshll.u32 %s5227_s25, 4  ;;  %s33_s26 = int_to_ptr.vmem [resolvable:$true] %s32_s26 }
  0x29   :  { %s5120_s29 = scalar_lea.vmem %s33_s26, 256  ;;  %p5125_p2 = scmp.lt.s32.totalorder %s33_s26, %s33_s26 }
  0x2a   :  { %p5121_p1 = scmp.ne.s32.totalorder %s33_s26, %s5120_s29  ;;  %p5126_p3 = scmp.lt.s32.totalorder %s5120_s29, %s5120_s29 }
  0x2c   :  { %p5127_p4 = por %p5126_p3, %p5125_p2 }
  0x2e   :  { %p5128_p5 = pnand %p5127_p4, %p5121_p1 }
  0x30   :  { %5131 = shalt.err (!%p5128_p5)
}
  0x31   :  { %s5228_s5 = smov 128   ;;  %s5229_s0 = smov 8  }
  0x32   :  { %s5923_s19 = sld [smem:[#allocation20_spill]]  ;;  %s5230_s20 = smov [#allocation7]  }
  0x33   :  { %s60_s21 = sshll.u32 %s5230_s20, 4  ;;  %s5231_s22 = smov [#allocation10]   ;;  %s61_s21 = int_to_ptr.vmem [resolvable:$true] %s60_s21 }
  0x34   :  { %s84_s8 = sshll.u32 %s5231_s22, 4  ;;  %s5140_s1 = scalar_lea.vmem %s61_s21, 32  ;;  %s85_s8 = int_to_ptr.vmem [resolvable:$true] %s84_s8 }
  0x35   :  { %p5141_p6 = scmp.ne.s32.totalorder %s61_s21, %s5140_s1  ;;  %p5145_p7 = scmp.lt.s32.totalorder %s61_s21, %s61_s21 }
  0x36   :  { %p5146_p8 = scmp.lt.s32.totalorder %s5140_s1, %s5140_s1 }
  0x38   :  { %38 = dma.hbm_to_vmem [thread:$0]  %s5923_s19, 256, %s33_s26, [#allocation3], %s5228_s5, %s5228_s5, %s5229_s0  }
  0x39   :  { %p5147_p9 = por %p5146_p8, %p5145_p7 }
  0x3b   :  { %p5148_p10 = pnand %p5147_p9, %p5141_p6 }
  0x3d   :  { %5151 = shalt.err (!%p5148_p10)
}
  0x3e   :  { %66 = dma.hbm_to_vmem [thread:$0]  %s5906_s4, 32, %s61_s21, [#allocation6], %s5223_s27, %s5223_s27, %s5224_s28  }
  0x3f   :  { %s5160_s24 = scalar_lea.vmem %s85_s8, 32  ;;  %p5165_p12 = scmp.lt.s32.totalorder %s85_s8, %s85_s8 }
  0x40   :  { %p5161_p11 = scmp.ne.s32.totalorder %s85_s8, %s5160_s24  ;;  %p5166_p13 = scmp.lt.s32.totalorder %s5160_s24, %s5160_s24 }
  0x42   :  { %p5167_p0 = por %p5166_p13, %p5165_p12 }
  0x44   :  { %p5168_p1 = pnand %p5167_p0, %p5161_p11 }
  0x46   :  { %5171 = shalt.err (!%p5168_p1)
}
  0x47   :  { %90 = dma.hbm_to_vmem [thread:$0]  %s5908_s6, 32, %s85_s8, [#allocation9], %s5223_s27, %s5223_s27, %s5224_s28  }
  0x48   :  { %s5232_s29 = smov [#allocation13]  }
  0x49   :  { %s114_s5 = sshll.u32 %s5232_s29, 4  ;;  %s115_s5 = int_to_ptr.vmem [resolvable:$true] %s114_s5 }
  0x4a   :  { %s5180_s0 = scalar_lea.vmem %s115_s5, 32  ;;  %p5185_p3 = scmp.lt.s32.totalorder %s115_s5, %s115_s5 }
  0x4b   :  { %p5181_p2 = scmp.ne.s32.totalorder %s115_s5, %s5180_s0  ;;  %p5186_p4 = scmp.lt.s32.totalorder %s5180_s0, %s5180_s0 }
  0x4d   :  { %p5187_p5 = por %p5186_p4, %p5185_p3 }
  0x4f   :  { %p5188_p6 = pnand %p5187_p5, %p5181_p2 }
  0x51   :  { %5191 = shalt.err (!%p5188_p6)
}
  0x52   :  { %120 = dma.hbm_to_vmem [thread:$0]  %s5913_s11, 32, %s115_s5, [#allocation12], %s5223_s27, %s5223_s27, %s5224_s28  }
  0x53   :  { %5212 = dma.done.wait [#allocation3], 256  }
  0x54   :  { %5213 = vsyncadd [#allocation3], 4294967040 }
  0x55   :  { %5214 = dma.done.wait [#allocation6], 64  }
  0x56   :  { %5215 = vsyncadd [#allocation6], 4294967232 }
  0x57   :  { %5216 = dma.done.wait [#allocation9], 64  }
  0x58   :  { %5217 = vsyncadd [#allocation9], 4294967232 }
  0x59   :  { %5218 = dma.done.wait [#allocation12], 64  }
  0x5a   :  { %5219 = vsyncadd [#allocation12], 4294967232  ;;  %vm165_vm0 = vcmask 261120   ;;  %s5924_s19 = sld [smem:[#allocation21_spill]]  ;;  %v5382_v2 = vld [vmem:[#allocation2] sm:$0xff]  ;;  %v5392_v5 = vld [vmem:[#allocation2 + $0x8] sm:$0xff] }
  0x5b   :  { %4660 = vmatprep.mubr.msk.f32.mxu0 %vm165_vm0, %v5382_v2  ;;  %v5233_v6 = vmov 0.0   ;;  %vm5234_vm1 = vmmov 0   ;;  %v4397_v8 = vld [vmem:[#allocation5] ss:$0 sm:$0xff]  ;;  %s5235_s8 = smov 96   ;;  %vm254_vm2 = vcmask 64512  }
  0x5c   :  { %4663 = vmatprep.subr.mxu1 %v5233_v6  ;;  %4665 = vmatprep.mubr.msk.f32.mxu1 %vm5234_vm1, %v5233_v6  ;;  %s5236_s1 = smov 64   ;;  %s5237_s2 = smov 88   ;;  %v247_v63 = vld [vmem:[%s5905_s3] sm:$0xff]  ;;  %vm2063_vm3 = vcmask 523264   ;;  %vm4241_vm4 = vcmask 1041409   ;;  %vm4244_vm5 = vcmask 254976  }
  0x5d   :  { %s5238_s23 = smov 120   ;;  %s5239_s24 = smov 56   ;;  %vm4377_vm6 = vcmask 123904  }
  0x5e   :  { %s5240_s25 = smov 112   ;;  %s5241_s26 = smov 80  }
  0x5f   :  { %s5242_s30 = smov 48   ;;  %s5243_s6 = smov 72  }
  0x60   :  { %v157_v0 = vld [vmem:[%s5924_s19 + $0x18] sm:$0xff]  ;;  %v156_v1 = vld [vmem:[%s5924_s19 + $0x10] sm:$0xff]  ;;  %v155_v3 = vld [vmem:[%s5924_s19 + $0x8] sm:$0xff]  ;;  %s5244_s18 = smov 104   ;;  %s5245_s11 = smov 40  }
  0x61   :  { %4652 = vmatprep.subr.mxu0 %v157_v0  ;;  %v154_v4 = vld [vmem:[%s5924_s19] sm:$0xff] }
  0x62   :  { %4653 = vmatpush3.msra.mxu0 %v157_v0 }
  0x63   :  { %4654 = vmatprep.subr.mxu0 %v156_v1 }
  0x64   :  { %4655 = vmatpush3.msra.mxu0 %v156_v1 }
  0x65   :  { %4656 = vmatprep.subr.mxu0 %v155_v3 }
  0x66   :  { %4657 = vmatpush3.msra.mxu0 %v155_v3 }
  0x67   :  { %4658 = vmatprep.subr.mxu0 %v154_v4 }
  0x68   :  { %4659 = vmatpush3.msra.mxu0 %v154_v4 }
  0x69   :  { %4661 = vmatmul.mubr.msk.f32.vlgmr.msra.gmra.mxu0 %vm165_vm0, %v5392_v5  ;;  %4673 = vmatprep.subr.mxu0 %v5233_v6 }
  0x6a   :  { %4675 = vmatprep.mubr.msk.f32.mxu0 %vm5234_vm1, %v5233_v6 }
 0x129   :  { %v4662_v7 = vpop.f32.mrf.mxu0 }
 0x12a   :  { %v5406_v11 = vadd.f32 %v4662_v7, %v4397_v8 }
 0x12b   :  { %v238_v9 = vpop.f32.mrf.mxu0 }
 0x12c   :  { %v5402_v10 = vadd.f32 %v4397_v8, %v238_v9 }
 0x12e   :  { %252 = vrot.lane.b32.xlu0 %v5402_v10, %s5235_s8 }
 0x132   :  { %330 = vrot.lane.b32.xlu0 %v5406_v11, %s5235_s8 }
 0x1a0   :  { %v253_v12 = vpop.permute.xlu0 %252 }
 0x1a1   :  { %4664 = vmatpush3.xpose.msk.msra.mxu1 %vm254_vm2, %v253_v12 }
 0x1a2   :  { %4668 = vmatprep.subr.mxu1 %v5233_v6 }
 0x1a4   :  { %4666 = vmatmul.mubr.msk.f32.vlgmr.msra.gmra.mxu1 %vm254_vm2, %v5402_v10  ;;  %v331_v13 = vpop.permute.xlu0 %330 }
 0x1a5   :  { %4669 = vmatpush3.xpose.msk.msra.mxu1 %vm254_vm2, %v331_v13  ;;  %4670 = vmatprep.mubr.msk.f32.mxu1 %vm5234_vm1, %v5233_v6 }
 0x1a6   :  { %4678 = vmatprep.subr.mxu1 %v5233_v6 }
 0x1a8   :  { %4671 = vmatmul.mubr.msk.f32.vlgmr.msra.gmra.mxu1 %vm254_vm2, %v5406_v11 }
 0x1a9   :  { %4680 = vmatprep.mubr.msk.f32.mxu1 %vm5234_vm1, %v5233_v6 }
 0x264   :  { %v325_v14 = vpop.f32.mrf.mxu1 }
 0x265   :  { %v406_v15 = vsel %vm254_vm2, %v325_v14, -inf }
 0x266   :  { %407 = vmax.xlane.f32.xlu1 %v406_v15  ;;  %v4667_v16 = vpop.f32.mrf.mxu1  ;;  %v248_v15 = vld [vmem:[%s5905_s3 + $0x8] sm:$0xff] }
 0x268   :  { %v402_v17 = vpop.f32.mrf.mxu1 }
 0x269   :  { %v409_v18 = vsel %vm254_vm2, %v402_v17, -inf }
 0x26a   :  { %410 = vmax.xlane.f32.xlu1 %v409_v18  ;;  %v4672_v19 = vpop.f32.mrf.mxu1 }
 0x27b   :  { %428 = vrot.lane.b32.xlu1 %v5402_v10, %s5236_s1 }
 0x27f   :  { %504 = vrot.lane.b32.xlu1 %v5406_v11, %s5236_s1 }
 0x283   :  { %582 = vrot.lane.b32.xlu1 %v5402_v10, %s5237_s2 }
 0x287   :  { %660 = vrot.lane.b32.xlu1 %v5406_v11, %s5237_s2 }
 0x2ef   :  { %v408_v20 = vpop.xlane.xlu1 %407 }
 0x2f0   :  { %v412_v21 = vsub.f32 %v325_v14, %v408_v20 }
 0x2f2   :  { %v414_v22 = vmul.f32 1.442695, %v412_v21 }
 0x2f3   :  { %v411_v23 = vpop.xlane.xlu1 %410 }
 0x2f4   :  { %4970 = vpow2.f32 %v414_v22  ;;  %v413_v24 = vsub.f32 %v402_v17, %v411_v23 }
 0x2f6   :  { %v416_v25 = vmul.f32 1.442695, %v413_v24 }
 0x2f7   :  { %v429_v26 = vpop.permute.xlu1 %428 }
 0x2f8   :  { %4972 = vpow2.f32 %v416_v25  ;;  %4674 = vmatpush3.msra.mxu0 %v429_v26 }
 0x2f9   :  { %4683 = vmatprep.subr.mxu0 %v5233_v6 }
 0x2fb   :  { %v505_v27 = vpop.permute.xlu1 %504 }
 0x2fc   :  { %4679 = vmatpush3.msra.mxu1 %v505_v27 }
 0x2fd   :  { %4688 = vmatprep.subr.mxu1 %v5233_v6 }
 0x2ff   :  { %v583_v32 = vpop.permute.xlu1 %582 }
 0x301   :  { %v4971_v28 = vpop.eup %4970 }
 0x302   :  { %v418_v29 = vsel %vm254_vm2, %v4971_v28, 0.0 }
 0x303   :  { %419 = vadd.xlane.f32.xlu0 %v418_v29  ;;  %v661_v33 = vpop.permute.xlu1 %660 }
 0x305   :  { %v4973_v30 = vpop.eup %4972 }
 0x306   :  { %v421_v31 = vsel %vm254_vm2, %v4973_v30, 0.0 }
 0x307   :  { %422 = vadd.xlane.f32.xlu1 %v421_v31 }
 0x318   :  { %658 = vrot.lane.b32.xlu1 %v5406_v11, %s5238_s23 }
 0x319   :  { %580 = vrot.lane.b32.xlu0 %v5402_v10, %s5238_s23 }
 0x38c   :  { %v420_v34 = vpop.xlane.xlu0 %419 }
 0x38d   :  { %4974 = vrcp.f32 %v420_v34 }
 0x390   :  { %v423_v35 = vpop.xlane.xlu1 %422  ;;  %v581_v40 = vpop.permute.xlu0 %580 }
 0x391   :  { %4976 = vrcp.f32 %v423_v35 }
 0x394   :  { %v659_v41 = vpop.permute.xlu1 %658 }
 0x39a   :  { %v4975_v36 = vpop.eup %4974 }
 0x39b   :  { %v426_v37 = vmul.f32 %v4975_v36, %v4971_v28 }
 0x39d   :  { %4676 = vmatmul.mubr.msk.f32.vlgmr.msra.gmra.mxu0 %vm254_vm2, %v426_v37 }
 0x39e   :  { %v4977_v38 = vpop.eup %4976  ;;  %4684 = vmatpush3.xpose.msk.msra.mxu0 %vm254_vm2, %v583_v32  ;;  %4685 = vmatprep.mubr.msk.f32.mxu0 %vm5234_vm1, %v5233_v6 }
 0x39f   :  { %v427_v39 = vmul.f32 %v4977_v38, %v4973_v30  ;;  %4693 = vmatprep.subr.mxu0 %v5233_v6 }
 0x3a1   :  { %4681 = vmatmul.mubr.msk.f32.vlgmr.msra.gmra.mxu1 %vm254_vm2, %v427_v39  ;;  %4686 = vmatmul.mubr.msk.f32.vlgmr.msra.gmra.mxu0 %vm254_vm2, %v581_v40 }
 0x3a2   :  { %4689 = vmatpush3.xpose.msk.msra.mxu1 %vm254_vm2, %v661_v33  ;;  %4690 = vmatprep.mubr.msk.f32.mxu1 %vm5234_vm1, %v5233_v6 }
 0x3a3   :  { %4698 = vmatprep.subr.mxu1 %v5233_v6  ;;  %4695 = vmatprep.mubr.msk.f32.mxu0 %vm5234_vm1, %v5233_v6 }
 0x3a5   :  { %4691 = vmatmul.mubr.msk.f32.vlgmr.msra.gmra.mxu1 %vm254_vm2, %v659_v41 }
 0x3a6   :  { %4700 = vmatprep.mubr.msk.f32.mxu1 %vm5234_vm1, %v5233_v6 }
 0x45d   :  { %v500_v42 = vpop.f32.mrf.mxu0 }
 0x45f   :  { %v4677_v43 = vpop.f32.mrf.mxu0 }
 0x461   :  { %v576_v44 = vpop.f32.mrf.mxu1  ;;  %v654_v45 = vpop.f32.mrf.mxu0 }
 0x462   :  { %v736_v46 = vsel %vm254_vm2, %v654_v45, -inf }
 0x463   :  { %v4682_v47 = vpop.f32.mrf.mxu1  ;;  %737 = vmax.xlane.f32.xlu1 %v736_v46  ;;  %v4687_v48 = vpop.f32.mrf.mxu0 }
 0x465   :  { %v732_v49 = vpop.f32.mrf.mxu1 }
 0x466   :  { %v739_v50 = vsel %vm254_vm2, %v732_v49, -inf }
 0x467   :  { %740 = vmax.xlane.f32.xlu0 %v739_v50  ;;  %v4692_v51 = vpop.f32.mrf.mxu1 }
 0x468   :  { %v249_v51 = vld [vmem:[%s5905_s3 + $0x10] sm:$0xff] }
 0x47d   :  { %834 = vrot.lane.b32.xlu0 %v5406_v11, %s5239_s24 }
 0x481   :  { %1072 = vrot.lane.b32.xlu0 %v5402_v10, %s5240_s25 }
 0x4ec   :  { %v738_v52 = vpop.xlane.xlu1 %737 }
 0x4ed   :  { %v742_v53 = vsub.f32 %v654_v45, %v738_v52 }
 0x4ef   :  { %v744_v54 = vmul.f32 1.442695, %v742_v53 }
 0x4f0   :  { %v741_v55 = vpop.xlane.xlu0 %740 }
 0x4f1   :  { %4978 = vpow2.f32 %v744_v54  ;;  %v743_v56 = vsub.f32 %v732_v49, %v741_v55 }
 0x4f3   :  { %v746_v57 = vmul.f32 1.442695, %v743_v56 }
 0x4f4   :  { %v835_v58 = vpop.permute.xlu0 %834 }
 0x4f5   :  { %4980 = vpow2.f32 %v746_v57  ;;  %4699 = vmatpush3.msra.mxu1 %v835_v58 }
 0x4f6   :  { %4708 = vmatprep.subr.mxu1 %v247_v63 }
 0x4f8   :  { %v1073_v20 = vpop.permute.xlu0 %1072 }
 0x4fe   :  { %v4979_v59 = vpop.eup %4978 }
 0x4ff   :  { %v748_v60 = vsel %vm254_vm2, %v4979_v59, 0.0 }
 0x500   :  { %749 = vadd.xlane.f32.xlu1 %v748_v60 }
 0x502   :  { %v4981_v61 = vpop.eup %4980 }
 0x503   :  { %v751_v62 = vsel %vm254_vm2, %v4981_v61, 0.0 }
 0x504   :  { %752 = vadd.xlane.f32.xlu1 %v751_v62 }
 0x515   :  { %758 = vrot.lane.b32.xlu1 %v5402_v10, %s5239_s24 }
 0x519   :  { %1074 = vrot.lane.b32.xlu1 %v5402_v10, %s5241_s26 }
 0x51d   :  { %1152 = vrot.lane.b32.xlu1 %v5406_v11, %s5241_s26 }
 0x521   :  { %1150 = vrot.lane.b32.xlu1 %v5406_v11, %s5240_s25 }
 0x589   :  { %v750_v0 = vpop.xlane.xlu1 %749 }
 0x58a   :  { %4982 = vrcp.f32 %v750_v0 }
 0x58d   :  { %v753_v1 = vpop.xlane.xlu1 %752 }
 0x58e   :  { %4984 = vrcp.f32 %v753_v1 }
 0x591   :  { %v759_v3 = vpop.permute.xlu1 %758 }
 0x592   :  { %4694 = vmatpush3.msra.mxu0 %v759_v3 }
 0x593   :  { %4703 = vmatprep.subr.mxu0 %v248_v15 }
 0x595   :  { %v1075_v8 = vpop.permute.xlu1 %1074 }
 0x597   :  { %v4983_v4 = vpop.eup %4982 }
 0x598   :  { %v756_v7 = vmul.f32 %v4983_v4, %v4979_v59 }
 0x599   :  { %v1153_v13 = vpop.permute.xlu1 %1152 }
 0x59a   :  { %4696 = vmatmul.mubr.msk.f32.vlgmr.msra.gmra.mxu0 %vm254_vm2, %v756_v7 }
 0x59b   :  { %v4985_v9 = vpop.eup %4984  ;;  %4704 = vmatpush3.msra.mxu0 %v248_v15 }
 0x59c   :  { %v757_v12 = vmul.f32 %v4985_v9, %v4981_v61  ;;  %4713 = vmatprep.subr.mxu0 %v5233_v6 }
 0x59d   :  { %v1151_v14 = vpop.permute.xlu1 %1150 }
 0x59e   :  { %4701 = vmatmul.mubr.msk.f32.vlgmr.msra.gmra.mxu1 %vm254_vm2, %v757_v12 }
 0x59f   :  { %4710 = vmatprep.mubr.msk.f32.mxu1 %vm254_vm2, %v500_v42  ;;  %4709 = vmatpush3.msra.mxu1 %v247_v63 }
 0x5a0   :  { %4718 = vmatprep.subr.mxu1 %v5233_v6 }
 0x5a2   :  { %4711 = vmatmul.mubr.msk.f32.vlgmr.msra.gmra.mxu1 %vm254_vm2, %v576_v44 }
 0x5a3   :  { %4719 = vmatpush3.xpose.msk.msra.mxu1 %vm254_vm2, %v1153_v13  ;;  %4720 = vmatprep.mubr.msk.f32.mxu1 %vm5234_vm1, %v5233_v6 }
 0x5a4   :  { %4728 = vmatprep.subr.mxu1 %v5233_v6 }
 0x5a6   :  { %4721 = vmatmul.mubr.msk.f32.vlgmr.msra.gmra.mxu1 %vm254_vm2, %v1151_v14 }
 0x5a7   :  { %4730 = vmatprep.mubr.msk.f32.mxu1 %vm5234_vm1, %v5233_v6 }
 0x65a   :  { %v830_v16 = vpop.f32.mrf.mxu0 }
 0x65b   :  { %4705 = vmatprep.mubr.msk.f32.mxu0 %vm254_vm2, %v830_v16 }
 0x65c   :  { %v4697_v17 = vpop.f32.mrf.mxu0 }
 0x65e   :  { %v906_v18 = vpop.f32.mrf.mxu1 }
 0x65f   :  { %4706 = vmatmul.mubr.msk.f32.vlgmr.msra.gmra.mxu0 %vm254_vm2, %v906_v18 }
 0x660   :  { %4714 = vmatpush3.xpose.msk.msra.mxu0 %vm254_vm2, %v1075_v8  ;;  %v4702_v19 = vpop.f32.mrf.mxu1  ;;  %4715 = vmatprep.mubr.msk.f32.mxu0 %vm5234_vm1, %v5233_v6 }
 0x661   :  { %4723 = vmatprep.subr.mxu0 %v5233_v6 }
 0x662   :  { %v5497_v21 = vpop.f32.mrf.mxu1 }
 0x663   :  { %4716 = vmatmul.mubr.msk.f32.vlgmr.msra.gmra.mxu0 %vm254_vm2, %v1073_v20 }
 0x664   :  { %v5500_v22 = vpop.f32.mrf.mxu1  ;;  %4725 = vmatprep.mubr.msk.f32.mxu0 %vm5234_vm1, %v5233_v6 }
 0x666   :  { %v1224_v23 = vpop.f32.mrf.mxu1 }
 0x667   :  { %v1231_v24 = vsel %vm254_vm2, %v1224_v23, -inf }
 0x668   :  { %1232 = vmax.xlane.f32.xlu1 %v1231_v24  ;;  %v4722_v25 = vpop.f32.mrf.mxu1 }
 0x679   :  { %1250 = vrot.lane.b32.xlu1 %v5402_v10, %s5242_s30 }
 0x67d   :  { %1487 = vrot.lane.b32.xlu1 %v5402_v10, %s5243_s6 }
 0x681   :  { %1565 = vrot.lane.b32.xlu1 %v5406_v11, %s5243_s6 }
 0x685   :  { %1563 = vrot.lane.b32.xlu1 %v5406_v11, %s5244_s18 }
 0x6f1   :  { %v1233_v26 = vpop.xlane.xlu1 %1232 }
 0x6f2   :  { %v1235_v28 = vsub.f32 %v1224_v23, %v1233_v26 }
 0x6f4   :  { %v1238_v29 = vmul.f32 1.442695, %v1235_v28 }
 0x6f5   :  { %v1251_v27 = vpop.permute.xlu1 %1250 }
 0x6f6   :  { %4724 = vmatpush3.msra.mxu0 %v1251_v27  ;;  %4986 = vpow2.f32 %v1238_v29 }
 0x6f7   :  { %4733 = vmatprep.subr.mxu0 %v249_v51 }
 0x6f9   :  { %v1488_v47 = vpop.permute.xlu1 %1487 }
 0x6fd   :  { %v1566_v57 = vpop.permute.xlu1 %1565 }
 0x701   :  { %v1564_v60 = vpop.permute.xlu1 %1563 }
 0x703   :  { %v4987_v34 = vpop.eup %4986 }
 0x704   :  { %v1243_v36 = vsel %vm254_vm2, %v4987_v34, 0.0 }
 0x71f   :  { %v5513_v30 = vpop.f32.mrf.mxu0 }
 0x720   :  { %v1069_v3 = vadd.f32 %v5497_v21, %v5513_v30 }
 0x721   :  { %v5515_v31 = vpop.f32.mrf.mxu0 }
 0x722   :  { %v1064_v7 = vadd.f32 %v5500_v22, %v5515_v31 }
 0x723   :  { %v1146_v32 = vpop.f32.mrf.mxu0 }
 0x724   :  { %v1228_v33 = vsel %vm254_vm2, %v1146_v32, -inf }
 0x725   :  { %1229 = vmax.xlane.f32.xlu0 %v1228_v33  ;;  %v4717_v35 = vpop.f32.mrf.mxu0  ;;  %v4432_v33 = vld [vmem:[#allocation7] ss:$0 sm:$0xff] }
 0x729   :  { %1244 = vadd.xlane.f32.xlu0 %v1243_v36 }
 0x7ae   :  { %v1230_v37 = vpop.xlane.xlu0 %1229 }
 0x7af   :  { %v1234_v38 = vsub.f32 %v1146_v32, %v1230_v37 }
 0x7b1   :  { %v1236_v39 = vmul.f32 1.442695, %v1234_v38 }
 0x7b2   :  { %v1245_v42 = vpop.xlane.xlu0 %1244 }
 0x7b3   :  { %4988 = vpow2.f32 %v1236_v39 }
 0x7b4   :  { %4990 = vrcp.f32 %v1245_v42 }
 0x7c0   :  { %v4989_v40 = vpop.eup %4988 }
 0x7c1   :  { %v1240_v41 = vsel %vm254_vm2, %v4989_v40, 0.0  ;;  %v4991_v44 = vpop.eup %4990 }
 0x7c2   :  { %1241 = vadd.xlane.f32.xlu0 %v1240_v41  ;;  %v1249_v46 = vmul.f32 %v4991_v44, %v4987_v34 }
 0x7d8   :  { %1326 = vrot.lane.b32.xlu0 %v5406_v11, %s5242_s30 }
 0x7dc   :  { %1485 = vrot.lane.b32.xlu0 %v5402_v10, %s5244_s18 }
 0x84b   :  { %v1242_v43 = vpop.xlane.xlu0 %1241 }
 0x84c   :  { %4992 = vrcp.f32 %v1242_v43 }
 0x84f   :  { %v1327_v45 = vpop.permute.xlu0 %1326 }
 0x850   :  { %4729 = vmatpush3.msra.mxu1 %v1327_v45 }
 0x851   :  { %4731 = vmatmul.mubr.msk.f32.vlgmr.msra.gmra.mxu1 %vm254_vm2, %v1249_v46  ;;  %4738 = vmatprep.subr.mxu1 %v5233_v6 }
 0x852   :  { %4739 = vmatpush3.xpose.msk.msra.mxu1 %vm254_vm2, %v1488_v47  ;;  %4740 = vmatprep.mubr.msk.f32.mxu1 %vm5234_vm1, %v5233_v6 }
 0x853   :  { %v1486_v48 = vpop.permute.xlu0 %1485  ;;  %4748 = vmatprep.subr.mxu1 %v5233_v6 }
 0x855   :  { %4741 = vmatmul.mubr.msk.f32.vlgmr.msra.gmra.mxu1 %vm254_vm2, %v1486_v48 }
 0x856   :  { %4750 = vmatprep.mubr.msk.f32.mxu1 %vm5234_vm1, %v5233_v6 }
 0x859   :  { %v4993_v49 = vpop.eup %4992 }
 0x85a   :  { %v1248_v50 = vmul.f32 %v4993_v49, %v4989_v40 }
 0x85c   :  { %4726 = vmatmul.mubr.msk.f32.vlgmr.msra.gmra.mxu0 %vm254_vm2, %v1248_v50 }
 0x85d   :  { %4734 = vmatpush3.msra.mxu0 %v249_v51 }
 0x85e   :  { %4743 = vmatprep.subr.mxu0 %v5233_v6 }
 0x911   :  { %v1398_v52 = vpop.f32.mrf.mxu1 }
 0x913   :  { %v4732_v53 = vpop.f32.mrf.mxu1 }
 0x914   :  { %v1955_v53 = vld [vmem:[%s5909_s7 + $0x8] sm:$0xff] }
 0x915   :  { %v1559_v54 = vpop.f32.mrf.mxu1 }
 0x916   :  { %v1641_v55 = vsel %vm254_vm2, %v1559_v54, -inf }
 0x917   :  { %1642 = vmax.xlane.f32.xlu0 %v1641_v55  ;;  %v4742_v56 = vpop.f32.mrf.mxu1  ;;  %v2055_v55 = vld [vmem:[%s5911_s9 + $0x38] sm:$0xff] }
 0x918   :  { %v2054_v56 = vld [vmem:[%s5911_s9 + $0x30] sm:$0xff] }
 0x91c   :  { %v1322_v58 = vpop.f32.mrf.mxu0 }
 0x91d   :  { %4735 = vmatprep.mubr.msk.f32.mxu0 %vm254_vm2, %v1322_v58  ;;  %v2052_v58 = vld [vmem:[%s5911_s9 + $0x20] sm:$0xff] }
 0x91e   :  { %v4727_v59 = vpop.f32.mrf.mxu0  ;;  %4736 = vmatmul.mubr.msk.f32.vlgmr.msra.gmra.mxu0 %vm254_vm2, %v1398_v52  ;;  %v1956_v52 = vld [vmem:[%s5909_s7 + $0x10] sm:$0xff] }
 0x91f   :  { %4744 = vmatpush3.xpose.msk.msra.mxu0 %vm254_vm2, %v1566_v57  ;;  %4745 = vmatprep.mubr.msk.f32.mxu0 %vm5234_vm1, %v5233_v6  ;;  %v2053_v57 = vld [vmem:[%s5911_s9 + $0x28] sm:$0xff] }
 0x920   :  { %4753 = vmatprep.subr.mxu0 %v5233_v6 }
 0x922   :  { %4746 = vmatmul.mubr.msk.f32.vlgmr.msra.gmra.mxu0 %vm254_vm2, %v1564_v60 }
 0x923   :  { %4755 = vmatprep.mubr.msk.f32.mxu0 %vm5234_vm1, %v5233_v6 }
 0x9a0   :  { %v1643_v61 = vpop.xlane.xlu0 %1642 }
 0x9a1   :  { %v1647_v62 = vsub.f32 %v1559_v54, %v1643_v61  ;;  %v1954_v54 = vld [vmem:[%s5909_s7] sm:$0xff] }
 0x9a3   :  { %v1649_v63 = vmul.f32 1.442695, %v1647_v62 }
 0x9a5   :  { %4994 = vpow2.f32 %v1649_v63 }
 0x9b2   :  { %v4995_v0 = vpop.eup %4994 }
 0x9b3   :  { %v1653_v1 = vsel %vm254_vm2, %v4995_v0, 0.0 }
 0x9b4   :  { %1654 = vadd.xlane.f32.xlu0 %v1653_v1 }
 0x9de   :  { %v4737_v4 = vpop.f32.mrf.mxu0 }
 0x9df   :  { %v1484_v8 = vadd.f32 %v4737_v4, %v1069_v3  ;;  %v4433_v3 = vld [vmem:[#allocation8] ss:$0 sm:$0xff] }
 0x9e0   :  { %v1474_v9 = vpop.f32.mrf.mxu0 }
 0x9e1   :  { %v1483_v12 = vadd.f32 %v1474_v9, %v1064_v7 }
 0x9e2   :  { %v1637_v13 = vpop.f32.mrf.mxu0 }
 0x9e3   :  { %v1644_v14 = vsel %vm254_vm2, %v1637_v13, -inf }
 0x9e4   :  { %1645 = vmax.xlane.f32.xlu1 %v1644_v14  ;;  %v4747_v15 = vpop.f32.mrf.mxu0 }
 0x9f5   :  { %1663 = vrot.lane.b32.xlu1 %v5402_v10, %s5245_s11  ;;  %v250_v10 = vld [vmem:[%s5905_s3 + $0x18] sm:$0xff] }
 0xa3d   :  { %v1655_v16 = vpop.xlane.xlu0 %1654 }
 0xa3e   :  { %4996 = vrcp.f32 %v1655_v16  ;;  %v2051_v16 = vld [vmem:[%s5911_s9 + $0x18] sm:$0xff] }
 0xa4b   :  { %v4997_v18 = vpop.eup %4996 }
 0xa4c   :  { %v1661_v22 = vmul.f32 %v4997_v18, %v4995_v0  ;;  %v2049_v18 = vld [vmem:[%s5911_s9 + $0x8] sm:$0xff] }
 0xa6d   :  { %v1646_v17 = vpop.xlane.xlu1 %1645 }
 0xa6e   :  { %v1648_v19 = vsub.f32 %v1637_v13, %v1646_v17  ;;  %v2050_v17 = vld [vmem:[%s5911_s9 + $0x10] sm:$0xff] }
 0xa70   :  { %v1651_v20 = vmul.f32 1.442695, %v1648_v19  ;;  %v2048_v19 = vld [vmem:[%s5911_s9] sm:$0xff] }
 0xa71   :  { %v1664_v21 = vpop.permute.xlu1 %1663 }
 0xa72   :  { %4998 = vpow2.f32 %v1651_v20  ;;  %4749 = vmatpush3.msra.mxu1 %v1664_v21  ;;  %v4435_v20 = vld [vmem:[#allocation11] ss:$0 sm:$0xff] }
 0xa73   :  { %4751 = vmatmul.mubr.msk.f32.vlgmr.msra.gmra.mxu1 %vm254_vm2, %v1661_v22  ;;  %4758 = vmatprep.subr.mxu1 %v250_v10 }
 0xa74   :  { %4759 = vmatpush3.msra.mxu1 %v250_v10 }
 0xa75   :  { %4774 = vmatprep.subr.mxu1 %v2055_v55 }
 0xa7f   :  { %v4999_v23 = vpop.eup %4998 }
 0xa80   :  { %v1656_v24 = vsel %vm254_vm2, %v4999_v23, 0.0 }
 0xa81   :  { %1657 = vadd.xlane.f32.xlu0 %v1656_v24 }
 0xa97   :  { %1739 = vrot.lane.b32.xlu0 %v5406_v11, %s5245_s11 }
 0xb0a   :  { %v1658_v25 = vpop.xlane.xlu0 %1657 }
 0xb0b   :  { %5000 = vrcp.f32 %v1658_v25 }
 0xb0e   :  { %v1740_v26 = vpop.permute.xlu0 %1739 }
 0xb0f   :  { %4754 = vmatpush3.msra.mxu0 %v1740_v26  ;;  %v4438_v26 = vld [vmem:[%s5912_s10] ss:$0 sm:$0xff] }
 0xb18   :  { %v5001_v27 = vpop.eup %5000 }
 0xb19   :  { %v1662_v28 = vmul.f32 %v5001_v27, %v4999_v23 }
 0xb1b   :  { %4756 = vmatmul.mubr.msk.f32.vlgmr.msra.gmra.mxu0 %vm254_vm2, %v1662_v28 }
 0xb33   :  { %v1735_v29 = vpop.f32.mrf.mxu1 }
 0xb34   :  { %4760 = vmatprep.mubr.msk.f32.mxu1 %vm254_vm2, %v1735_v29 }
 0xb35   :  { %v4752_v30 = vpop.f32.mrf.mxu1 }
 0xbdb   :  { %v1811_v31 = vpop.f32.mrf.mxu0 }
 0xbdc   :  { %4761 = vmatmul.mubr.msk.f32.vlgmr.msra.gmra.mxu1 %vm254_vm2, %v1811_v31 }
 0xbdd   :  { %v4757_v11 = vpop.f32.mrf.mxu0  ;;  %4775 = vmatpush3.msra.mxu1 %v2055_v55 }
 0xbde   :  { %4776 = vmatprep.subr.mxu1 %v2054_v56 }
 0xbdf   :  { %4777 = vmatpush3.msra.mxu1 %v2054_v56 }
 0xbe0   :  { %4778 = vmatprep.subr.mxu1 %v2053_v57 }
 0xbe1   :  { %4779 = vmatpush3.msra.mxu1 %v2053_v57 }
 0xbe2   :  { %4780 = vmatprep.subr.mxu1 %v2052_v58 }
 0xbe3   :  { %4781 = vmatpush3.msra.mxu1 %v2052_v58  ;;  %v4442_v58 = vld [vmem:[%s5914_s12] ss:$0 sm:$0xff] }
 0xbe4   :  { %4782 = vmatprep.subr.mxu1 %v2051_v16 }
 0xbe5   :  { %4783 = vmatpush3.msra.mxu1 %v2051_v16 }
 0xbe6   :  { %4784 = vmatprep.subr.mxu1 %v2050_v17 }
 0xbe7   :  { %4785 = vmatpush3.msra.mxu1 %v2050_v17 }
 0xbe8   :  { %4786 = vmatprep.subr.mxu1 %v2049_v18 }
 0xbe9   :  { %4787 = vmatpush3.msra.mxu1 %v2049_v18 }
 0xbea   :  { %4788 = vmatprep.subr.mxu1 %v2048_v19 }
 0xbeb   :  { %4789 = vmatpush3.msra.mxu1 %v2048_v19 }
 0xbec   :  { %4809 = vmatprep.subr.mxu1 %v5233_v6 }
 0xc9c   :  { %v4762_v32 = vpop.f32.mrf.mxu1 }
 0xc9d   :  { %v1897_v34 = vadd.f32 %v4762_v32, %v1484_v8 }
 0xc9e   :  { %v1887_v35 = vpop.f32.mrf.mxu1 }
 0xc9f   :  { %v1906_v36 = vadd.f32 %v4432_v33, %v1897_v34  ;;  %v1896_v37 = vadd.f32 %v1887_v35, %v1483_v12  ;;  %v4434_v12 = vld [vmem:[#allocation10] ss:$0 sm:$0xff] }
 0xca1   :  { %v1905_v38 = vadd.f32 %v4432_v33, %v1896_v37  ;;  %v1908_v39 = vadd.f32 %v1906_v36, %v5392_v5 }
 0xca3   :  { %v1914_v40 = vsel %vm165_vm0, %v1908_v39, 0.0  ;;  %v1907_v41 = vadd.f32 %v1905_v38, %v5382_v2  ;;  %v1957_v2 = vld [vmem:[%s5909_s7 + $0x18] sm:$0xff] }
 0xca4   :  { %1915 = vadd.xlane.f32.xlu0 %v1914_v40  ;;  %4763 = vmatprep.subr.mxu0 %v1957_v2 }
 0xca5   :  { %v1911_v42 = vsel %vm165_vm0, %v1907_v41, 0.0  ;;  %4764 = vmatpush3.msra.mxu0 %v1957_v2 }
 0xca6   :  { %1912 = vadd.xlane.f32.xlu1 %v1911_v42  ;;  %4765 = vmatprep.subr.mxu0 %v1956_v52 }
 0xca7   :  { %4766 = vmatpush3.msra.mxu0 %v1956_v52 }
 0xca8   :  { %4767 = vmatprep.subr.mxu0 %v1955_v53 }
 0xca9   :  { %4768 = vmatpush3.msra.mxu0 %v1955_v53  ;;  %v4441_v53 = vld [vmem:[#allocation13] ss:$0 sm:$0xff] }
 0xcaa   :  { %4769 = vmatprep.subr.mxu0 %v1954_v54 }
 0xcab   :  { %4770 = vmatpush3.msra.mxu0 %v1954_v54 }
 0xd2d   :  { %v1916_v43 = vpop.xlane.xlu0 %1915 }
 0xd2e   :  { %v1919_v44 = vmul.f32 0.03125, %v1916_v43 }
 0xd2f   :  { %v1913_v45 = vpop.xlane.xlu1 %1912 }
 0xd30   :  { %v1921_v46 = vsub.f32 %v1908_v39, %v1919_v44  ;;  %v1918_v47 = vmul.f32 0.03125, %v1913_v45  ;;  %v4446_v44 = vld [vmem:[%s5924_s19 + $0x38] sm:$0xff]  ;;  %v4445_v45 = vld [vmem:[%s5924_s19 + $0x30] sm:$0xff] }
 0xd31   :  { %4793 = vmatprep.subr.mxu0 %v4446_v44 }
 0xd32   :  { %v1920_v48 = vsub.f32 %v1907_v41, %v1918_v47  ;;  %v1923_v49 = vmul.f32 %v1921_v46, %v1921_v46  ;;  %v4443_v47 = vld [vmem:[%s5924_s19 + $0x20] sm:$0xff] }
 0xd34   :  { %v1927_v50 = vsel %vm165_vm0, %v1923_v49, 0.0  ;;  %v1922_v51 = vmul.f32 %v1920_v48, %v1920_v48 }
 0xd35   :  { %1928 = vadd.xlane.f32.xlu0 %v1927_v50 }
 0xd36   :  { %v1924_v5 = vsel %vm165_vm0, %v1922_v51, 0.0 }
 0xd37   :  { %1925 = vadd.xlane.f32.xlu1 %v1924_v5 }
 0xdbe   :  { %v1929_v59 = vpop.xlane.xlu0 %1928 }
 0xdbf   :  { %v1931_v60 = vmul.f32 0.03125, %v1929_v59 }
 0xdc0   :  { %v1926_v61 = vpop.xlane.xlu1 %1925 }
 0xdc1   :  { %v1933_v62 = vadd.f32 1e-05, %v1931_v60  ;;  %v1930_v63 = vmul.f32 0.03125, %v1926_v61 }
 0xdc3   :  { %5002 = vrsqrt.f32 %v1933_v62  ;;  %v1932_v0 = vadd.f32 1e-05, %v1930_v63  ;;  %v4447_v62 = vld [vmem:[#allocation5 + $0x1] ss:$0 sm:$0xff] }
 0xdc5   :  { %5004 = vrsqrt.f32 %v1932_v0 }
 0xdd0   :  { %v5003_v1 = vpop.eup %5002 }
 0xdd1   :  { %v1937_v4 = vmul.f32 %v5003_v1, %v1921_v46  ;;  %v4444_v46 = vld [vmem:[%s5924_s19 + $0x28] sm:$0xff] }
 0xdd2   :  { %v5005_v7 = vpop.eup %5004 }
 0xdd3   :  { %v1936_v8 = vmul.f32 %v5005_v7, %v1920_v48  ;;  %v1945_v9 = vmul.f32 %v4433_v3, %v1937_v4 }
 0xdd5   :  { %v1944_v13 = vmul.f32 %v4433_v3, %v1936_v8  ;;  %v1953_v15 = vadd.f32 %v4434_v12, %v1945_v9 }
 0xdd7   :  { %v1952_v14 = vadd.f32 %v4434_v12, %v1944_v13 }
 0xdd9   :  { %4771 = vmatprep.mubr.msk.f32.mxu0 %vm165_vm0, %v1952_v14 }
 0xdda   :  { %4772 = vmatmul.mubr.msk.f32.vlgmr.msra.gmra.mxu0 %vm165_vm0, %v1953_v15 }
 0xddb   :  { %4794 = vmatpush3.msra.mxu0 %v4446_v44 }
 0xddc   :  { %4795 = vmatprep.subr.mxu0 %v4445_v45 }
 0xddd   :  { %4796 = vmatpush3.msra.mxu0 %v4445_v45 }
 0xdde   :  { %4797 = vmatprep.subr.mxu0 %v4444_v46 }
 0xddf   :  { %4798 = vmatpush3.msra.mxu0 %v4444_v46 }
 0xde0   :  { %4799 = vmatprep.subr.mxu0 %v4443_v47 }
 0xde1   :  { %4800 = vmatpush3.msra.mxu0 %v4443_v47 }
 0xde2   :  { %4804 = vmatprep.subr.mxu0 %v5233_v6 }
 0xe9a   :  { %v4773_v21 = vpop.f32.mrf.mxu0 }
 0xe9b   :  { %v2043_v22 = vadd.f32 %v4773_v21, %v4435_v20 }
 0xe9c   :  { %v2037_v23 = vpop.f32.mrf.mxu0 }
 0xe9d   :  { %v2038_v24 = vadd.f32 %v4435_v20, %v2037_v23  ;;  %v2047_v25 = vmax.f32 %v2043_v22, 0.0 }
 0xe9f   :  { %v2046_v10 = vmax.f32 %v2038_v24, 0.0 }
 0xea1   :  { %4790 = vmatprep.mubr.msk.f32.mxu1 %vm2063_vm3, %v2046_v10 }
 0xea2   :  { %4791 = vmatmul.mubr.msk.f32.vlgmr.msra.gmra.mxu1 %vm2063_vm3, %v2047_v25 }
 0xea3   :  { %4811 = vmatprep.mubr.msk.f32.mxu1 %vm5234_vm1, %v5233_v6 }
 0xf62   :  { %v4792_v27 = vpop.f32.mrf.mxu1 }
 0xf63   :  { %v2142_v28 = vadd.f32 %v4792_v27, %v4438_v26 }
 0xf64   :  { %v2136_v29 = vpop.f32.mrf.mxu1 }
 0xf65   :  { %v2137_v30 = vadd.f32 %v4438_v26, %v2136_v29  ;;  %v2146_v31 = vadd.f32 %v2142_v28, %v1953_v15 }
 0xf67   :  { %v2152_v11 = vsel %vm165_vm0, %v2146_v31, 0.0  ;;  %v2145_v32 = vadd.f32 %v2137_v30, %v1952_v14 }
 0xf68   :  { %2153 = vadd.xlane.f32.xlu0 %v2152_v11 }
 0xf69   :  { %v2149_v33 = vsel %vm165_vm0, %v2145_v32, 0.0 }
 0xf6a   :  { %2150 = vadd.xlane.f32.xlu1 %v2149_v33 }
 0xff1   :  { %v2154_v34 = vpop.xlane.xlu0 %2153 }
 0xff2   :  { %v2156_v35 = vmul.f32 0.03125, %v2154_v34 }
 0xff3   :  { %v2151_v36 = vpop.xlane.xlu1 %2150 }
 0xff4   :  { %v2158_v37 = vsub.f32 %v2146_v31, %v2156_v35  ;;  %v2155_v38 = vmul.f32 0.03125, %v2151_v36 }
 0xff6   :  { %v2157_v39 = vsub.f32 %v2145_v32, %v2155_v38  ;;  %v2160_v40 = vmul.f32 %v2158_v37, %v2158_v37 }
 0xff8   :  { %v2164_v41 = vsel %vm165_vm0, %v2160_v40, 0.0  ;;  %v2159_v42 = vmul.f32 %v2157_v39, %v2157_v39 }
 0xff9   :  { %2165 = vadd.xlane.f32.xlu0 %v2164_v41 }
 0xffa   :  { %v2161_v43 = vsel %vm165_vm0, %v2159_v42, 0.0 }
 0xffb   :  { %2162 = vadd.xlane.f32.xlu1 %v2161_v43 }
0x1082   :  { %v2166_v48 = vpop.xlane.xlu0 %2165 }
0x1083   :  { %v2168_v49 = vmul.f32 0.03125, %v2166_v48 }
0x1084   :  { %v2163_v50 = vpop.xlane.xlu1 %2162 }
0x1085   :  { %v2170_v51 = vadd.f32 1e-05, %v2168_v49  ;;  %v2167_v5 = vmul.f32 0.03125, %v2163_v50 }
0x1087   :  { %5006 = vrsqrt.f32 %v2170_v51  ;;  %v2169_v2 = vadd.f32 1e-05, %v2167_v5 }
0x1089   :  { %5008 = vrsqrt.f32 %v2169_v2 }
0x1094   :  { %v5007_v52 = vpop.eup %5006 }
0x1095   :  { %v2174_v54 = vmul.f32 %v5007_v52, %v2158_v37 }
0x1096   :  { %v5009_v55 = vpop.eup %5008 }
0x1097   :  { %v2173_v56 = vmul.f32 %v5009_v55, %v2157_v39  ;;  %v2182_v57 = vmul.f32 %v4441_v53, %v2174_v54 }
0x1099   :  { %v2181_v59 = vmul.f32 %v4441_v53, %v2173_v56  ;;  %v5640_v61 = vadd.f32 %v4442_v58, %v2182_v57  ;;  %v4450_v57 = vld [vmem:[%s5905_s3 + $0x20] sm:$0xff] }
0x109b   :  { %v5638_v60 = vadd.f32 %v4442_v58, %v2181_v59 }
0x109d   :  { %4801 = vmatprep.mubr.msk.f32.mxu0 %vm165_vm0, %v5638_v60 }
0x109e   :  { %4802 = vmatmul.mubr.msk.f32.vlgmr.msra.gmra.mxu0 %vm165_vm0, %v5640_v61 }
0x109f   :  { %4806 = vmatprep.mubr.msk.f32.mxu0 %vm5234_vm1, %v5233_v6 }
0x115e   :  { %v4803_v63 = vpop.f32.mrf.mxu0 }
0x115f   :  { %v5648_v0 = vadd.f32 %v4803_v63, %v4447_v62 }
0x1160   :  { %v2276_v1 = vpop.f32.mrf.mxu0 }
0x1161   :  { %v5650_v3 = vadd.f32 %v4447_v62, %v2276_v1  ;;  %2368 = vrot.lane.b32.xlu0 %v5648_v0, %s5235_s8 }
0x1163   :  { %2291 = vrot.lane.b32.xlu1 %v5650_v3, %s5235_s8  ;;  %s5246_s8 = smov [#allocation14]  }
0x11d3   :  { %v2369_v4 = vpop.permute.xlu0 %2368 }
0x11d4   :  { %4810 = vmatpush3.xpose.msk.msra.mxu1 %vm254_vm2, %v2369_v4 }
0x11d5   :  { %v2292_v7 = vpop.permute.xlu1 %2291  ;;  %4819 = vmatprep.subr.mxu1 %v5233_v6 }
0x11d6   :  { %4805 = vmatpush3.xpose.msk.msra.mxu0 %vm254_vm2, %v2292_v7 }
0x11d7   :  { %4812 = vmatmul.mubr.msk.f32.vlgmr.msra.gmra.mxu1 %vm254_vm2, %v5648_v0  ;;  %4814 = vmatprep.subr.mxu0 %v5233_v6 }
0x11d8   :  { %4821 = vmatprep.mubr.msk.f32.mxu1 %vm5234_vm1, %v5233_v6 }
0x11d9   :  { %4807 = vmatmul.mubr.msk.f32.vlgmr.msra.gmra.mxu0 %vm254_vm2, %v5650_v3 }
0x11da   :  { %4816 = vmatprep.mubr.msk.f32.mxu0 %vm5234_vm1, %v5233_v6 }
0x1297   :  { %v2440_v8 = vpop.f32.mrf.mxu1 }
0x1298   :  { %v2447_v9 = vsel %vm254_vm2, %v2440_v8, -inf }
0x1299   :  { %2448 = vmax.xlane.f32.xlu0 %v2447_v9  ;;  %v2363_v12 = vpop.f32.mrf.mxu0  ;;  %v4813_v13 = vpop.f32.mrf.mxu1  ;;  %v4451_v9 = vld [vmem:[%s5905_s3 + $0x28] sm:$0xff] }
0x129a   :  { %v2444_v14 = vsel %vm254_vm2, %v2363_v12, -inf }
0x129b   :  { %2445 = vmax.xlane.f32.xlu1 %v2444_v14  ;;  %v4808_v15 = vpop.f32.mrf.mxu0 }
0x12ac   :  { %2466 = vrot.lane.b32.xlu1 %v5650_v3, %s5236_s1 }
0x12af   :  { %2542 = vrot.lane.b32.xlu0 %v5648_v0, %s5236_s1 }
0x12b0   :  { %2620 = vrot.lane.b32.xlu1 %v5650_v3, %s5237_s2 }
0x12b4   :  { %2698 = vrot.lane.b32.xlu1 %v5648_v0, %s5237_s2 }
0x1322   :  { %v2449_v16 = vpop.xlane.xlu0 %2448 }
0x1323   :  { %v2451_v17 = vsub.f32 %v2440_v8, %v2449_v16 }
0x1324   :  { %v2446_v18 = vpop.xlane.xlu1 %2445 }
0x1325   :  { %v2454_v19 = vmul.f32 1.442695, %v2451_v17  ;;  %v2450_v20 = vsub.f32 %v2363_v12, %v2446_v18 }
0x1326   :  { %v2543_v21 = vpop.permute.xlu0 %2542 }
0x1327   :  { %5010 = vpow2.f32 %v2454_v19  ;;  %v2452_v22 = vmul.f32 1.442695, %v2450_v20  ;;  %4820 = vmatpush3.msra.mxu1 %v2543_v21 }
0x1328   :  { %v2467_v23 = vpop.permute.xlu1 %2466  ;;  %4829 = vmatprep.subr.mxu1 %v5233_v6 }
0x1329   :  { %5012 = vpow2.f32 %v2452_v22  ;;  %4815 = vmatpush3.msra.mxu0 %v2467_v23 }
0x132a   :  { %4824 = vmatprep.subr.mxu0 %v5233_v6 }
0x132c   :  { %v2621_v27 = vpop.permute.xlu1 %2620 }
0x1330   :  { %v2699_v28 = vpop.permute.xlu1 %2698 }
0x1334   :  { %v5011_v24 = vpop.eup %5010 }
0x1335   :  { %v2459_v10 = vsel %vm254_vm2, %v5011_v24, 0.0 }
0x1336   :  { %v5013_v25 = vpop.eup %5012  ;;  %2460 = vadd.xlane.f32.xlu0 %v2459_v10 }
0x1337   :  { %v2456_v26 = vsel %vm254_vm2, %v5013_v25, 0.0 }
0x1338   :  { %2457 = vadd.xlane.f32.xlu1 %v2456_v26 }
0x1349   :  { %2696 = vrot.lane.b32.xlu1 %v5648_v0, %s5238_s23 }
0x134c   :  { %2618 = vrot.lane.b32.xlu0 %v5650_v3, %s5238_s23 }
0x13bf   :  { %v2461_v29 = vpop.xlane.xlu0 %2460 }
0x13c0   :  { %5014 = vrcp.f32 %v2461_v29 }
0x13c1   :  { %v2458_v30 = vpop.xlane.xlu1 %2457 }
0x13c2   :  { %5016 = vrcp.f32 %v2458_v30 }
0x13c3   :  { %v2619_v35 = vpop.permute.xlu0 %2618 }
0x13c5   :  { %v2697_v34 = vpop.permute.xlu1 %2696 }
0x13cd   :  { %v5015_v31 = vpop.eup %5014 }
0x13ce   :  { %v2465_v11 = vmul.f32 %v5015_v31, %v5011_v24 }
0x13cf   :  { %v5017_v32 = vpop.eup %5016 }
0x13d0   :  { %4822 = vmatmul.mubr.msk.f32.vlgmr.msra.gmra.mxu1 %vm254_vm2, %v2465_v11  ;;  %v2464_v33 = vmul.f32 %v5017_v32, %v5013_v25 }
0x13d1   :  { %4830 = vmatpush3.xpose.msk.msra.mxu1 %vm254_vm2, %v2699_v28  ;;  %4831 = vmatprep.mubr.msk.f32.mxu1 %vm5234_vm1, %v5233_v6 }
0x13d2   :  { %4817 = vmatmul.mubr.msk.f32.vlgmr.msra.gmra.mxu0 %vm254_vm2, %v2464_v33  ;;  %4839 = vmatprep.subr.mxu1 %v5233_v6 }
0x13d3   :  { %4825 = vmatpush3.xpose.msk.msra.mxu0 %vm254_vm2, %v2621_v27  ;;  %4826 = vmatprep.mubr.msk.f32.mxu0 %vm5234_vm1, %v5233_v6 }
0x13d4   :  { %4832 = vmatmul.mubr.msk.f32.vlgmr.msra.gmra.mxu1 %vm254_vm2, %v2697_v34  ;;  %4834 = vmatprep.subr.mxu0 %v5233_v6 }
0x13d5   :  { %4841 = vmatprep.mubr.msk.f32.mxu1 %vm5234_vm1, %v5233_v6 }
0x13d6   :  { %4827 = vmatmul.mubr.msk.f32.vlgmr.msra.gmra.mxu0 %vm254_vm2, %v2619_v35 }
0x13d7   :  { %4836 = vmatprep.mubr.msk.f32.mxu0 %vm5234_vm1, %v5233_v6 }
0x1490   :  { %v2614_v36 = vpop.f32.mrf.mxu1 }
0x1492   :  { %v2538_v37 = vpop.f32.mrf.mxu0  ;;  %v4823_v38 = vpop.f32.mrf.mxu1 }
0x1494   :  { %v4818_v39 = vpop.f32.mrf.mxu0  ;;  %v2770_v40 = vpop.f32.mrf.mxu1 }
0x1495   :  { %v2777_v41 = vsel %vm254_vm2, %v2770_v40, -inf }
0x1496   :  { %2778 = vmax.xlane.f32.xlu1 %v2777_v41  ;;  %v2692_v42 = vpop.f32.mrf.mxu0  ;;  %v4833_v43 = vpop.f32.mrf.mxu1 }
0x1497   :  { %v2774_v44 = vsel %vm254_vm2, %v2692_v42, -inf }
0x1498   :  { %2775 = vmax.xlane.f32.xlu0 %v2774_v44  ;;  %v4828_v45 = vpop.f32.mrf.mxu0 }
0x1499   :  { %v4452_v45 = vld [vmem:[%s5905_s3 + $0x30] sm:$0xff] }
0x14a7   :  { %2796 = vrot.lane.b32.xlu1 %v5650_v3, %s5239_s24 }
0x14ab   :  { %3112 = vrot.lane.b32.xlu1 %v5650_v3, %s5241_s26 }
0x14af   :  { %3190 = vrot.lane.b32.xlu1 %v5648_v0, %s5241_s26 }
0x14b3   :  { %3188 = vrot.lane.b32.xlu1 %v5648_v0, %s5240_s25 }
0x151f   :  { %v2779_v46 = vpop.xlane.xlu1 %2778 }
0x1520   :  { %v2781_v47 = vsub.f32 %v2770_v40, %v2779_v46 }
0x1521   :  { %v2776_v48 = vpop.xlane.xlu0 %2775 }
0x1522   :  { %v2784_v49 = vmul.f32 1.442695, %v2781_v47  ;;  %v2780_v50 = vsub.f32 %v2692_v42, %v2776_v48 }
0x1523   :  { %v2797_v51 = vpop.permute.xlu1 %2796 }
0x1524   :  { %5018 = vpow2.f32 %v2784_v49  ;;  %v2782_v5 = vmul.f32 1.442695, %v2780_v50  ;;  %4835 = vmatpush3.msra.mxu0 %v2797_v51 }
0x1525   :  { %4844 = vmatprep.subr.mxu0 %v4451_v9 }
0x1526   :  { %5020 = vpow2.f32 %v2782_v5 }
0x1527   :  { %v3113_v59 = vpop.permute.xlu1 %3112 }
0x152b   :  { %v3191_v4 = vpop.permute.xlu1 %3190 }
0x152f   :  { %v3189_v8 = vpop.permute.xlu1 %3188 }
0x1531   :  { %v5019_v2 = vpop.eup %5018 }
0x1532   :  { %v2789_v52 = vsel %vm254_vm2, %v5019_v2, 0.0 }
0x1533   :  { %v5021_v53 = vpop.eup %5020  ;;  %2790 = vadd.xlane.f32.xlu0 %v2789_v52 }
0x1534   :  { %v2786_v54 = vsel %vm254_vm2, %v5021_v53, 0.0 }
0x1537   :  { %2787 = vadd.xlane.f32.xlu0 %v2786_v54 }
0x154d   :  { %2872 = vrot.lane.b32.xlu0 %v5648_v0, %s5239_s24 }
0x1551   :  { %3110 = vrot.lane.b32.xlu0 %v5650_v3, %s5240_s25 }
0x15bc   :  { %v2791_v55 = vpop.xlane.xlu0 %2790 }
0x15bd   :  { %5022 = vrcp.f32 %v2791_v55 }
0x15c0   :  { %v2788_v56 = vpop.xlane.xlu0 %2787 }
0x15c1   :  { %5024 = vrcp.f32 %v2788_v56 }
0x15c4   :  { %v2873_v58 = vpop.permute.xlu0 %2872 }
0x15c5   :  { %4840 = vmatpush3.msra.mxu1 %v2873_v58 }
0x15c6   :  { %4849 = vmatprep.subr.mxu1 %v4450_v57 }
0x15c8   :  { %v3111_v19 = vpop.permute.xlu0 %3110 }
0x15ca   :  { %v5023_v62 = vpop.eup %5022 }
0x15cb   :  { %v2795_v63 = vmul.f32 %v5023_v62, %v5019_v2 }
0x15cd   :  { %4842 = vmatmul.mubr.msk.f32.vlgmr.msra.gmra.mxu1 %vm254_vm2, %v2795_v63 }
0x15ce   :  { %v5025_v1 = vpop.eup %5024  ;;  %4851 = vmatprep.mubr.msk.f32.mxu1 %vm254_vm2, %v2538_v37  ;;  %4850 = vmatpush3.msra.mxu1 %v4450_v57 }
0x15cf   :  { %4859 = vmatprep.subr.mxu1 %v5233_v6  ;;  %v2794_v7 = vmul.f32 %v5025_v1, %v5021_v53 }
0x15d1   :  { %4837 = vmatmul.mubr.msk.f32.vlgmr.msra.gmra.mxu0 %vm254_vm2, %v2794_v7  ;;  %4852 = vmatmul.mubr.msk.f32.vlgmr.msra.gmra.mxu1 %vm254_vm2, %v2614_v36 }
0x15d2   :  { %4860 = vmatpush3.xpose.msk.msra.mxu1 %vm254_vm2, %v3191_v4  ;;  %4861 = vmatprep.mubr.msk.f32.mxu1 %vm5234_vm1, %v5233_v6 }
0x15d3   :  { %4869 = vmatprep.subr.mxu1 %v5233_v6  ;;  %4845 = vmatpush3.msra.mxu0 %v4451_v9 }
0x15d4   :  { %4854 = vmatprep.subr.mxu0 %v5233_v6 }
0x15d5   :  { %4862 = vmatmul.mubr.msk.f32.vlgmr.msra.gmra.mxu1 %vm254_vm2, %v3189_v8 }
0x15d6   :  { %4871 = vmatprep.mubr.msk.f32.mxu1 %vm5234_vm1, %v5233_v6 }
0x168d   :  { %v2944_v12 = vpop.f32.mrf.mxu1 }
0x168f   :  { %v4843_v13 = vpop.f32.mrf.mxu1 }
0x1691   :  { %v2868_v14 = vpop.f32.mrf.mxu0  ;;  %v5737_v15 = vpop.f32.mrf.mxu1 }
0x1692   :  { %4846 = vmatprep.mubr.msk.f32.mxu0 %vm254_vm2, %v2868_v14 }
0x1693   :  { %v4838_v16 = vpop.f32.mrf.mxu0  ;;  %4847 = vmatmul.mubr.msk.f32.vlgmr.msra.gmra.mxu0 %vm254_vm2, %v2944_v12  ;;  %v5741_v17 = vpop.f32.mrf.mxu1 }
0x1694   :  { %4855 = vmatpush3.xpose.msk.msra.mxu0 %vm254_vm2, %v3113_v59  ;;  %4856 = vmatprep.mubr.msk.f32.mxu0 %vm5234_vm1, %v5233_v6 }
0x1695   :  { %v3262_v18 = vpop.f32.mrf.mxu1  ;;  %4864 = vmatprep.subr.mxu0 %v5233_v6 }
0x1696   :  { %v3269_v20 = vsel %vm254_vm2, %v3262_v18, -inf }
0x1697   :  { %3270 = vmax.xlane.f32.xlu1 %v3269_v20  ;;  %4857 = vmatmul.mubr.msk.f32.vlgmr.msra.gmra.mxu0 %vm254_vm2, %v3111_v19  ;;  %v4863_v21 = vpop.f32.mrf.mxu1 }
0x1698   :  { %4866 = vmatprep.mubr.msk.f32.mxu0 %vm5234_vm1, %v5233_v6 }
0x16a8   :  { %3288 = vrot.lane.b32.xlu1 %v5650_v3, %s5242_s30 }
0x16ac   :  { %3525 = vrot.lane.b32.xlu1 %v5650_v3, %s5243_s6 }
0x16b0   :  { %3603 = vrot.lane.b32.xlu1 %v5648_v0, %s5243_s6 }
0x16b4   :  { %3601 = vrot.lane.b32.xlu1 %v5648_v0, %s5244_s18 }
0x1720   :  { %v3271_v22 = vpop.xlane.xlu1 %3270 }
0x1721   :  { %v3273_v24 = vsub.f32 %v3262_v18, %v3271_v22 }
0x1723   :  { %v3276_v10 = vmul.f32 1.442695, %v3273_v24 }
0x1724   :  { %v3289_v23 = vpop.permute.xlu1 %3288 }
0x1725   :  { %4865 = vmatpush3.msra.mxu0 %v3289_v23  ;;  %5026 = vpow2.f32 %v3276_v10 }
0x1726   :  { %4874 = vmatprep.subr.mxu0 %v4452_v45 }
0x1728   :  { %v3526_v41 = vpop.permute.xlu1 %3525 }
0x172c   :  { %v3604_v51 = vpop.permute.xlu1 %3603 }
0x1730   :  { %v3602_v52 = vpop.permute.xlu1 %3601 }
0x1732   :  { %v5027_v29 = vpop.eup %5026 }
0x1733   :  { %v3281_v31 = vsel %vm254_vm2, %v5027_v29, 0.0 }
0x1753   :  { %v5759_v25 = vpop.f32.mrf.mxu0 }
0x1754   :  { %v3107_v58 = vadd.f32 %v5737_v15, %v5759_v25 }
0x1755   :  { %v5761_v26 = vpop.f32.mrf.mxu0 }
0x1756   :  { %v3102_v62 = vadd.f32 %v5741_v17, %v5761_v26 }
0x1757   :  { %v3184_v27 = vpop.f32.mrf.mxu0 }
0x1758   :  { %v3266_v28 = vsel %vm254_vm2, %v3184_v27, -inf }
0x1759   :  { %3267 = vmax.xlane.f32.xlu0 %v3266_v28  ;;  %v4858_v30 = vpop.f32.mrf.mxu0  ;;  %v4486_v28 = vld [vmem:[#allocation7 + $0x1] ss:$0 sm:$0xff] }
0x175d   :  { %3282 = vadd.xlane.f32.xlu0 %v3281_v31 }
0x17e2   :  { %v3268_v11 = vpop.xlane.xlu0 %3267 }
0x17e3   :  { %v3272_v32 = vsub.f32 %v3184_v27, %v3268_v11 }
0x17e5   :  { %v3274_v33 = vmul.f32 1.442695, %v3272_v32 }
0x17e6   :  { %v3283_v36 = vpop.xlane.xlu0 %3282 }
0x17e7   :  { %5028 = vpow2.f32 %v3274_v33 }
0x17e8   :  { %5030 = vrcp.f32 %v3283_v36 }
0x17f4   :  { %v5029_v34 = vpop.eup %5028 }
0x17f5   :  { %v3278_v35 = vsel %vm254_vm2, %v5029_v34, 0.0  ;;  %v5031_v38 = vpop.eup %5030 }
0x17f6   :  { %3279 = vadd.xlane.f32.xlu0 %v3278_v35  ;;  %v3287_v40 = vmul.f32 %v5031_v38, %v5027_v29 }
0x180c   :  { %3364 = vrot.lane.b32.xlu0 %v5648_v0, %s5242_s30 }
0x1810   :  { %3523 = vrot.lane.b32.xlu0 %v5650_v3, %s5244_s18 }
0x187f   :  { %v3280_v37 = vpop.xlane.xlu0 %3279 }
0x1880   :  { %5032 = vrcp.f32 %v3280_v37 }
0x1883   :  { %v3365_v39 = vpop.permute.xlu0 %3364 }
0x1884   :  { %4870 = vmatpush3.msra.mxu1 %v3365_v39 }
0x1885   :  { %4872 = vmatmul.mubr.msk.f32.vlgmr.msra.gmra.mxu1 %vm254_vm2, %v3287_v40  ;;  %4879 = vmatprep.subr.mxu1 %v5233_v6 }
0x1886   :  { %4880 = vmatpush3.xpose.msk.msra.mxu1 %vm254_vm2, %v3526_v41  ;;  %4881 = vmatprep.mubr.msk.f32.mxu1 %vm5234_vm1, %v5233_v6 }
0x1887   :  { %v3524_v42 = vpop.permute.xlu0 %3523  ;;  %4889 = vmatprep.subr.mxu1 %v5233_v6 }
0x1889   :  { %4882 = vmatmul.mubr.msk.f32.vlgmr.msra.gmra.mxu1 %vm254_vm2, %v3524_v42 }
0x188a   :  { %4891 = vmatprep.mubr.msk.f32.mxu1 %vm5234_vm1, %v5233_v6 }
0x188d   :  { %v5033_v43 = vpop.eup %5032 }
0x188e   :  { %v3286_v44 = vmul.f32 %v5033_v43, %v5029_v34 }
0x1890   :  { %4867 = vmatmul.mubr.msk.f32.vlgmr.msra.gmra.mxu0 %vm254_vm2, %v3286_v44 }
0x1891   :  { %4875 = vmatpush3.msra.mxu0 %v4452_v45 }
0x1892   :  { %4884 = vmatprep.subr.mxu0 %v5233_v6 }
0x1945   :  { %v3436_v46 = vpop.f32.mrf.mxu1 }
0x1947   :  { %v4873_v47 = vpop.f32.mrf.mxu1 }
0x1948   :  { %v4490_v47 = vld [vmem:[%s5909_s7 + $0x28] sm:$0xff] }
0x1949   :  { %v3597_v48 = vpop.f32.mrf.mxu1 }
0x194a   :  { %v3679_v49 = vsel %vm254_vm2, %v3597_v48, -inf }
0x194b   :  { %3680 = vmax.xlane.f32.xlu0 %v3679_v49  ;;  %v4883_v50 = vpop.f32.mrf.mxu1  ;;  %v4503_v49 = vld [vmem:[%s5911_s9 + $0x78] sm:$0xff] }
0x194c   :  { %v4502_v50 = vld [vmem:[%s5911_s9 + $0x70] sm:$0xff] }
0x1950   :  { %v3360_v5 = vpop.f32.mrf.mxu0 }
0x1951   :  { %4876 = vmatprep.mubr.msk.f32.mxu0 %vm254_vm2, %v3360_v5  ;;  %v4500_v5 = vld [vmem:[%s5911_s9 + $0x60] sm:$0xff] }
0x1952   :  { %v4868_v2 = vpop.f32.mrf.mxu0  ;;  %4877 = vmatmul.mubr.msk.f32.vlgmr.msra.gmra.mxu0 %vm254_vm2, %v3436_v46  ;;  %v4491_v46 = vld [vmem:[%s5909_s7 + $0x30] sm:$0xff] }
0x1953   :  { %4885 = vmatpush3.xpose.msk.msra.mxu0 %vm254_vm2, %v3604_v51  ;;  %4886 = vmatprep.mubr.msk.f32.mxu0 %vm5234_vm1, %v5233_v6  ;;  %v4501_v51 = vld [vmem:[%s5911_s9 + $0x68] sm:$0xff] }
0x1954   :  { %4894 = vmatprep.subr.mxu0 %v5233_v6 }
0x1956   :  { %4887 = vmatmul.mubr.msk.f32.vlgmr.msra.gmra.mxu0 %vm254_vm2, %v3602_v52 }
0x1957   :  { %4896 = vmatprep.mubr.msk.f32.mxu0 %vm5234_vm1, %v5233_v6 }
0x19d4   :  { %v3681_v53 = vpop.xlane.xlu0 %3680 }
0x19d5   :  { %v3685_v54 = vsub.f32 %v3597_v48, %v3681_v53  ;;  %v4489_v48 = vld [vmem:[%s5909_s7 + $0x20] sm:$0xff] }
0x19d7   :  { %v3687_v55 = vmul.f32 1.442695, %v3685_v54 }
0x19d9   :  { %5034 = vpow2.f32 %v3687_v55 }
0x19e6   :  { %v5035_v56 = vpop.eup %5034 }
0x19e7   :  { %v3691_v57 = vsel %vm254_vm2, %v5035_v56, 0.0 }
0x19e8   :  { %3692 = vadd.xlane.f32.xlu0 %v3691_v57 }
0x1a12   :  { %v4878_v59 = vpop.f32.mrf.mxu0 }
0x1a13   :  { %v3522_v63 = vadd.f32 %v4878_v59, %v3107_v58  ;;  %v4487_v58 = vld [vmem:[#allocation8 + $0x1] ss:$0 sm:$0xff] }
0x1a14   :  { %v3512_v1 = vpop.f32.mrf.mxu0 }
0x1a15   :  { %v3521_v4 = vadd.f32 %v3512_v1, %v3102_v62 }
0x1a16   :  { %v3675_v7 = vpop.f32.mrf.mxu0 }
0x1a17   :  { %v3682_v8 = vsel %vm254_vm2, %v3675_v7, -inf }
0x1a18   :  { %3683 = vmax.xlane.f32.xlu1 %v3682_v8  ;;  %v4888_v9 = vpop.f32.mrf.mxu0 }
0x1a29   :  { %3701 = vrot.lane.b32.xlu1 %v5650_v3, %s5245_s11  ;;  %v4453_v3 = vld [vmem:[%s5905_s3 + $0x38] sm:$0xff] }
0x1a71   :  { %v3693_v12 = vpop.xlane.xlu0 %3692 }
0x1a72   :  { %5036 = vrcp.f32 %v3693_v12  ;;  %v4499_v12 = vld [vmem:[%s5911_s9 + $0x58] sm:$0xff] }
0x1a7f   :  { %v5037_v14 = vpop.eup %5036 }
0x1a80   :  { %v3699_v19 = vmul.f32 %v5037_v14, %v5035_v56  ;;  %v4497_v14 = vld [vmem:[%s5911_s9 + $0x48] sm:$0xff] }
0x1aa1   :  { %v3684_v13 = vpop.xlane.xlu1 %3683 }
0x1aa2   :  { %v3686_v15 = vsub.f32 %v3675_v7, %v3684_v13  ;;  %v4498_v13 = vld [vmem:[%s5911_s9 + $0x50] sm:$0xff] }
0x1aa4   :  { %v3689_v16 = vmul.f32 1.442695, %v3686_v15  ;;  %v4496_v15 = vld [vmem:[%s5911_s9 + $0x40] sm:$0xff] }
0x1aa5   :  { %v3702_v18 = vpop.permute.xlu1 %3701 }
0x1aa6   :  { %5038 = vpow2.f32 %v3689_v16  ;;  %4890 = vmatpush3.msra.mxu1 %v3702_v18  ;;  %v4493_v16 = vld [vmem:[#allocation11 + $0x1] ss:$0 sm:$0xff] }
0x1aa7   :  { %4892 = vmatmul.mubr.msk.f32.vlgmr.msra.gmra.mxu1 %vm254_vm2, %v3699_v19  ;;  %4899 = vmatprep.subr.mxu1 %v4453_v3 }
0x1aa8   :  { %4900 = vmatpush3.msra.mxu1 %v4453_v3 }
0x1aa9   :  { %4915 = vmatprep.subr.mxu1 %v4503_v49 }
0x1ab3   :  { %v5039_v17 = vpop.eup %5038 }
0x1ab4   :  { %v3694_v20 = vsel %vm254_vm2, %v5039_v17, 0.0 }
0x1ab5   :  { %3695 = vadd.xlane.f32.xlu0 %v3694_v20 }
0x1acb   :  { %3777 = vrot.lane.b32.xlu0 %v5648_v0, %s5245_s11 }
0x1b3e   :  { %v3696_v21 = vpop.xlane.xlu0 %3695 }
0x1b3f   :  { %5040 = vrcp.f32 %v3696_v21 }
0x1b42   :  { %v3778_v22 = vpop.permute.xlu0 %3777 }
0x1b43   :  { %4895 = vmatpush3.msra.mxu0 %v3778_v22  ;;  %v4505_v22 = vld [vmem:[%s5912_s10 + $0x1] ss:$0 sm:$0xff] }
0x1b4c   :  { %v5041_v23 = vpop.eup %5040 }
0x1b4d   :  { %v3700_v24 = vmul.f32 %v5041_v23, %v5039_v17 }
0x1b4f   :  { %4897 = vmatmul.mubr.msk.f32.vlgmr.msra.gmra.mxu0 %vm254_vm2, %v3700_v24 }
0x1b67   :  { %v3773_v10 = vpop.f32.mrf.mxu1 }
0x1b68   :  { %4901 = vmatprep.mubr.msk.f32.mxu1 %vm254_vm2, %v3773_v10 }
0x1b69   :  { %v4893_v25 = vpop.f32.mrf.mxu1 }
0x1c0f   :  { %v3849_v26 = vpop.f32.mrf.mxu0 }
0x1c10   :  { %4902 = vmatmul.mubr.msk.f32.vlgmr.msra.gmra.mxu1 %vm254_vm2, %v3849_v26 }
0x1c11   :  { %v4898_v0 = vpop.f32.mrf.mxu0  ;;  %4916 = vmatpush3.msra.mxu1 %v4503_v49 }
0x1c12   :  { %4917 = vmatprep.subr.mxu1 %v4502_v50 }
0x1c13   :  { %4918 = vmatpush3.msra.mxu1 %v4502_v50 }
0x1c14   :  { %4919 = vmatprep.subr.mxu1 %v4501_v51 }
0x1c15   :  { %4920 = vmatpush3.msra.mxu1 %v4501_v51 }
0x1c16   :  { %4921 = vmatprep.subr.mxu1 %v4500_v5 }
0x1c17   :  { %4922 = vmatpush3.msra.mxu1 %v4500_v5 }
0x1c18   :  { %4923 = vmatprep.subr.mxu1 %v4499_v12 }
0x1c19   :  { %4924 = vmatpush3.msra.mxu1 %v4499_v12 }
0x1c1a   :  { %4925 = vmatprep.subr.mxu1 %v4498_v13 }
0x1c1b   :  { %4926 = vmatpush3.msra.mxu1 %v4498_v13 }
0x1c1c   :  { %4927 = vmatprep.subr.mxu1 %v4497_v14 }
0x1c1d   :  { %4928 = vmatpush3.msra.mxu1 %v4497_v14 }
0x1c1e   :  { %4929 = vmatprep.subr.mxu1 %v4496_v15 }
0x1c1f   :  { %4930 = vmatpush3.msra.mxu1 %v4496_v15 }
0x1cd0   :  { %v4903_v27 = vpop.f32.mrf.mxu1 }
0x1cd1   :  { %v3935_v29 = vadd.f32 %v4903_v27, %v3522_v63 }
0x1cd2   :  { %v3925_v30 = vpop.f32.mrf.mxu1 }
0x1cd3   :  { %v3945_v31 = vadd.f32 %v4486_v28, %v3935_v29  ;;  %v3934_v11 = vadd.f32 %v3925_v30, %v3521_v4  ;;  %v4488_v4 = vld [vmem:[#allocation10 + $0x1] ss:$0 sm:$0xff] }
0x1cd5   :  { %v3944_v32 = vadd.f32 %v4486_v28, %v3934_v11  ;;  %v3947_v33 = vadd.f32 %v3945_v31, %v5640_v61 }
0x1cd7   :  { %v3955_v34 = vsel %vm165_vm0, %v3947_v33, 0.0  ;;  %v3946_v35 = vadd.f32 %v3944_v32, %v5638_v60  ;;  %v4492_v60 = vld [vmem:[%s5909_s7 + $0x38] sm:$0xff] }
0x1cd8   :  { %3956 = vadd.xlane.f32.xlu0 %v3955_v34  ;;  %4904 = vmatprep.subr.mxu0 %v4492_v60 }
0x1cd9   :  { %v3952_v36 = vsel %vm165_vm0, %v3946_v35, 0.0  ;;  %4905 = vmatpush3.msra.mxu0 %v4492_v60 }
0x1cda   :  { %3953 = vadd.xlane.f32.xlu1 %v3952_v36  ;;  %4906 = vmatprep.subr.mxu0 %v4491_v46 }
0x1cdb   :  { %4907 = vmatpush3.msra.mxu0 %v4491_v46  ;;  %v4510_v46 = vld [vmem:[%s5914_s12 + $0x1] ss:$0 sm:$0xff] }
0x1cdc   :  { %4908 = vmatprep.subr.mxu0 %v4490_v47 }
0x1cdd   :  { %4909 = vmatpush3.msra.mxu0 %v4490_v47 }
0x1cde   :  { %4910 = vmatprep.subr.mxu0 %v4489_v48 }
0x1cdf   :  { %4911 = vmatpush3.msra.mxu0 %v4489_v48 }
0x1ce0   :  { %4934 = vmatprep.subr.mxu0 %v5233_v6 }
0x1d61   :  { %v3957_v37 = vpop.xlane.xlu0 %3956 }
0x1d62   :  { %v3959_v38 = vmul.f32 0.03125, %v3957_v37 }
0x1d63   :  { %v3954_v39 = vpop.xlane.xlu1 %3953 }
0x1d64   :  { %v3961_v40 = vsub.f32 %v3947_v33, %v3959_v38  ;;  %v3958_v41 = vmul.f32 0.03125, %v3954_v39 }
0x1d66   :  { %v3960_v42 = vsub.f32 %v3946_v35, %v3958_v41  ;;  %v3963_v43 = vmul.f32 %v3961_v40, %v3961_v40 }
0x1d68   :  { %v3967_v44 = vsel %vm165_vm0, %v3963_v43, 0.0  ;;  %v3962_v45 = vmul.f32 %v3960_v42, %v3960_v42 }
0x1d69   :  { %3968 = vadd.xlane.f32.xlu0 %v3967_v44 }
0x1d6a   :  { %v3964_v61 = vsel %vm165_vm0, %v3962_v45, 0.0  ;;  %v4509_v45 = vld [vmem:[#allocation13 + $0x1] ss:$0 sm:$0xff] }
0x1d6b   :  { %3965 = vadd.xlane.f32.xlu1 %v3964_v61 }
0x1df2   :  { %v3969_v2 = vpop.xlane.xlu0 %3968 }
0x1df3   :  { %v3971_v52 = vmul.f32 0.03125, %v3969_v2 }
0x1df4   :  { %v3966_v53 = vpop.xlane.xlu1 %3965 }
0x1df5   :  { %v3973_v54 = vadd.f32 1e-05, %v3971_v52  ;;  %v3970_v55 = vmul.f32 0.03125, %v3966_v53 }
0x1df7   :  { %5042 = vrsqrt.f32 %v3973_v54  ;;  %v3972_v56 = vadd.f32 1e-05, %v3970_v55 }
0x1df9   :  { %5044 = vrsqrt.f32 %v3972_v56 }
0x1e04   :  { %v5043_v57 = vpop.eup %5042 }
0x1e05   :  { %v3977_v59 = vmul.f32 %v5043_v57, %v3961_v40 }
0x1e06   :  { %v5045_v62 = vpop.eup %5044 }
0x1e07   :  { %v3976_v63 = vmul.f32 %v5045_v62, %v3960_v42  ;;  %v3985_v1 = vmul.f32 %v4487_v58, %v3977_v59 }
0x1e09   :  { %v3984_v7 = vmul.f32 %v4487_v58, %v3976_v63  ;;  %v3993_v9 = vadd.f32 %v4488_v4, %v3985_v1 }
0x1e0b   :  { %v3992_v8 = vadd.f32 %v4488_v4, %v3984_v7  ;;  %v4293_v4 = vld [vmem:[%s5917_s15 + $0x18] sm:$0xff]  ;;  %v4292_v7 = vld [vmem:[%s5917_s15 + $0x10] sm:$0xff] }
0x1e0d   :  { %4912 = vmatprep.mubr.msk.f32.mxu0 %vm165_vm0, %v3992_v8 }
0x1e0e   :  { %4913 = vmatmul.mubr.msk.f32.vlgmr.msra.gmra.mxu0 %vm165_vm0, %v3993_v9 }
0x1e0f   :  { %4942 = vmatprep.mubr.msk.f32.mxu0 %vm5234_vm1, %v5233_v6  ;;  %4935 = vmatpush3.msra.mxu0 %v4293_v4 }
0x1e10   :  { %4936 = vmatprep.subr.mxu0 %v5233_v6 }
0x1e11   :  { %4937 = vmatpush3.msra.mxu0 %v4292_v7 }
0x1e12   :  { %4938 = vmatprep.subr.mxu0 %v5233_v6 }
0x1ece   :  { %v4914_v18 = vpop.f32.mrf.mxu0 }
0x1ecf   :  { %v4085_v19 = vadd.f32 %v4914_v18, %v4493_v16 }
0x1ed0   :  { %v4079_v17 = vpop.f32.mrf.mxu0 }
0x1ed1   :  { %v4080_v20 = vadd.f32 %v4493_v16, %v4079_v17  ;;  %v4089_v21 = vmax.f32 %v4085_v19, 0.0  ;;  %v4511_v19 = vld [vmem:[%s5915_s13] ss:$0 sm:$0xff]  ;;  %s4385_s13 = sshll.u32 %s5246_s8, 4  ;;  %s4386_s13 = int_to_ptr.vmem [resolvable:$true] %s4385_s13 }
0x1ed2   :  { %p5197_p8 = scmp.lt.s32.totalorder %s4386_s13, %s4386_s13 }
0x1ed3   :  { %v4088_v3 = vmax.f32 %v4080_v20, 0.0 }
0x1ed5   :  { %4931 = vmatprep.mubr.msk.f32.mxu1 %vm2063_vm3, %v4088_v3 }
0x1ed6   :  { %4932 = vmatmul.mubr.msk.f32.vlgmr.msra.gmra.mxu1 %vm2063_vm3, %v4089_v21  ;;  %v4512_v21 = vld [vmem:[%s5916_s14] ss:$0 sm:$0xff]  ;;  %s5192_s14 = scalar_lea.vmem %s4386_s13, 32 }
0x1ed7   :  { %p5193_p7 = scmp.ne.s32.totalorder %s4386_s13, %s5192_s14  ;;  %p5198_p9 = scmp.lt.s32.totalorder %s5192_s14, %s5192_s14 }
0x1ed9   :  { %p5199_p10 = por %p5198_p9, %p5197_p8 }
0x1edb   :  { %p5200_p11 = pnand %p5199_p10, %p5193_p7 }
0x1f96   :  { %v4933_v23 = vpop.f32.mrf.mxu1 }
0x1f97   :  { %v4185_v24 = vadd.f32 %v4933_v23, %v4505_v22 }
0x1f98   :  { %v4179_v10 = vpop.f32.mrf.mxu1 }
0x1f99   :  { %v4180_v25 = vadd.f32 %v4505_v22, %v4179_v10  ;;  %v4189_v26 = vadd.f32 %v4185_v24, %v3993_v9  ;;  %v4290_v9 = vld [vmem:[%s5917_s15] sm:$0xff] }
0x1f9a   :  { %v4513_v10 = vld [vmem:[%s5918_s16] ss:$0 sm:$0xff] }
0x1f9b   :  { %v4197_v0 = vsel %vm165_vm0, %v4189_v26, 0.0  ;;  %v4188_v27 = vadd.f32 %v4180_v25, %v3992_v8  ;;  %v4291_v8 = vld [vmem:[%s5917_s15 + $0x8] sm:$0xff] }
0x1f9c   :  { %4198 = vadd.xlane.f32.xlu1 %v4197_v0  ;;  %4939 = vmatpush3.msra.mxu0 %v4291_v8 }
0x1f9d   :  { %v4194_v28 = vsel %vm165_vm0, %v4188_v27, 0.0  ;;  %4940 = vmatprep.subr.mxu0 %v5233_v6 }
0x1f9e   :  { %4195 = vadd.xlane.f32.xlu0 %v4194_v28  ;;  %4941 = vmatpush3.msra.mxu0 %v4290_v9 }
0x2025   :  { %v4199_v29 = vpop.xlane.xlu1 %4198 }
0x2026   :  { %v4201_v30 = vmul.f32 0.03125, %v4199_v29 }
0x2027   :  { %v4196_v31 = vpop.xlane.xlu0 %4195 }
0x2028   :  { %v4203_v11 = vsub.f32 %v4189_v26, %v4201_v30  ;;  %v4200_v32 = vmul.f32 0.03125, %v4196_v31 }
0x202a   :  { %v4202_v33 = vsub.f32 %v4188_v27, %v4200_v32  ;;  %v4205_v34 = vmul.f32 %v4203_v11, %v4203_v11 }
0x202c   :  { %v4209_v35 = vsel %vm165_vm0, %v4205_v34, 0.0  ;;  %v4204_v36 = vmul.f32 %v4202_v33, %v4202_v33 }
0x202d   :  { %4210 = vadd.xlane.f32.xlu1 %v4209_v35 }
0x202e   :  { %v4206_v37 = vsel %vm165_vm0, %v4204_v36, 0.0 }
0x202f   :  { %4207 = vadd.xlane.f32.xlu0 %v4206_v37 }
0x20b6   :  { %v4211_v38 = vpop.xlane.xlu1 %4210 }
0x20b7   :  { %v4213_v39 = vmul.f32 0.03125, %v4211_v38 }
0x20b8   :  { %v4208_v40 = vpop.xlane.xlu0 %4207 }
0x20b9   :  { %v4215_v41 = vadd.f32 1e-05, %v4213_v39  ;;  %v4212_v42 = vmul.f32 0.03125, %v4208_v40 }
0x20bb   :  { %5046 = vrsqrt.f32 %v4215_v41  ;;  %v4214_v43 = vadd.f32 1e-05, %v4212_v42 }
0x20bd   :  { %5048 = vrsqrt.f32 %v4214_v43 }
0x20c8   :  { %v5047_v44 = vpop.eup %5046 }
0x20c9   :  { %v4219_v61 = vmul.f32 %v5047_v44, %v4203_v11 }
0x20ca   :  { %v5049_v60 = vpop.eup %5048 }
0x20cb   :  { %v4218_v47 = vmul.f32 %v5049_v60, %v4202_v33  ;;  %v4227_v48 = vmul.f32 %v4509_v45, %v4219_v61 }
0x20cd   :  { %v4226_v49 = vmul.f32 %v4509_v45, %v4218_v47  ;;  %v4235_v50 = vadd.f32 %v4510_v46, %v4227_v48 }
0x20cf   :  { %v4234_v51 = vadd.f32 %v4510_v46, %v4226_v49  ;;  %v4240_v5 = vrot.slane %v4235_v50, 7 }
0x20d1   :  { %v4242_v2 = vsel %vm4241_vm4, %v4240_v5, %v4234_v51 }
0x20d2   :  { %v4245_v52 = vsel %vm4244_vm5, %v4242_v2, 0.0 }
0x20d3   :  { %4246 = vadd.xlane.f32.xlu1 %v4245_v52 }
0x215c   :  { %v4247_v53 = vpop.xlane.xlu1 %4246 }
0x215d   :  { %v4248_v54 = vmul.f32 0.03125, %v4247_v53 }
0x215f   :  { %v4250_v55 = vrot.slane %v4248_v54, 1  ;;  %v4253_v56 = vsub.f32 %v4234_v51, %v4248_v54 }
0x2161   :  { %v4254_v57 = vsub.f32 %v4235_v50, %v4250_v55  ;;  %v4255_v59 = vmul.f32 %v4253_v56, %v4253_v56 }
0x2163   :  { %v4256_v58 = vmul.f32 %v4254_v57, %v4254_v57 }
0x2165   :  { %v4259_v62 = vrot.slane %v4256_v58, 7 }
0x2167   :  { %v4260_v63 = vsel %vm4241_vm4, %v4259_v62, %v4255_v59 }
0x2168   :  { %v4262_v1 = vsel %vm4244_vm5, %v4260_v63, 0.0 }
0x2169   :  { %4263 = vadd.xlane.f32.xlu0 %v4262_v1 }
0x21f2   :  { %v4264_v12 = vpop.xlane.xlu0 %4263 }
0x21f3   :  { %v4265_v13 = vmul.f32 0.03125, %v4264_v12 }
0x21f5   :  { %v4266_v14 = vadd.f32 1e-05, %v4265_v13 }
0x21f7   :  { %5050 = vrsqrt.f32 %v4266_v14 }
0x2204   :  { %v5051_v15 = vpop.eup %5050 }
0x2205   :  { %v4269_v16 = vrot.slane %v5051_v15, 1  ;;  %v4272_v18 = vmul.f32 %v5051_v15, %v4253_v56 }
0x2207   :  { %v4273_v17 = vmul.f32 %v4269_v16, %v4254_v57  ;;  %v4280_v20 = vmul.f32 %v4511_v19, %v4272_v18 }
0x2209   :  { %v4281_v3 = vmul.f32 %v4511_v19, %v4273_v17  ;;  %v4288_v22 = vadd.f32 %v4512_v21, %v4280_v20 }
0x220b   :  { %v4289_v6 = vadd.f32 %v4512_v21, %v4281_v3 }
0x220d   :  { %v4303_v23 = vrot.slane %v4289_v6, 7 }
0x220f   :  { %v4304_v24 = vsel %vm4241_vm4, %v4303_v23, %v4288_v22 }
0x2210   :  { %4943 = vmatmul.mubr.msk.f32.vlgmr.msra.gmra.mxu0 %vm165_vm0, %v4304_v24 }
0x22d0   :  { %v4373_v25 = vpop.f32.mrf.mxu0 }
0x22d1   :  { %v4374_v26 = vadd.f32 %v4513_v10, %v4373_v25 }
0x22d2   :  { %v4944_v0 = vpop.f32.mrf.mxu0 }
0x22d3   :  { %4378 = vst.msk [vmem:[#allocation14] sm:$0x3] %vm4377_vm6, %v4374_v26 }
0x22d4   :  { %5203 = shalt.err (!%p5200_p11)
}
0x22d5   :  { %4388 = dma.vmem_to_hbm [thread:$0]  %s4386_s13, 32, %s5919_s17, [#allocation4]  }
0x22d6   :  { %5220 = dma.done.wait [#allocation4], 32  }
0x22d7   :  { %5221 = vsyncadd [#allocation4], 4294967264 }
0x22d8   :  { %4392 = vsyncpa [#allocation3], 1 }
0x22d9   :  { %4393 = vsyncpa [#allocation6], 1 }
0x22da   :  { %4394 = vsyncpa [#allocation9], 1 }
0x22db   :  { %4395 = vsyncpa [#allocation12], 1 }
0x22dc   :  { %4396 = vsyncpa [#allocation4], 1 }

</bundles_post_ra>
